<compile_context>
chip_gen: v7x
topology: tpu7x:2x2x1
jax: 0.10.0
libtpu: 0.0.40
codegen_flags: <defaults>
</compile_context>

<pallas_src>
import jax
import jax.numpy as jnp
from jax.experimental import pallas as pl
from jax.experimental.pallas import tpu as pltpu

BN_EPS = 1e-5

_CP = pltpu.CompilerParams(vmem_limit_bytes=48 * 1024 * 1024)


def _softplus(x):
    # nn.Softplus(beta=1); logaddexp is numerically stable for large |x|
    return jnp.logaddexp(x, 0.0)


def _vmem():
    return pl.BlockSpec(memory_space=pltpu.MemorySpace.VMEM)


# ----------------------------- Pallas kernels ------------------------------

def embed_kernel(x_ref, wT_ref, b_ref, o_ref):
    # y = x @ W^T + b, weight passed pre-transposed ([in, out]) in bf16.
    o_ref[...] = (
        jnp.dot(x_ref[...].astype(jnp.bfloat16), wT_ref[...],
                preferred_element_type=jnp.float32)
        + b_ref[...]
    )


def cgcnn_conv_kernel(atom_ref, nbrg_ref, edge_ref,
                      wsT_ref, wnT_ref, weT_ref, b_ref, o_ref):
    # atom_ref: [N, A]      f32   current atom features (residual input)
    # nbrg_ref: [M*N, A]    bf16  gathered neighbor features, slot-major
    # edge_ref: [M*N, E]    bf16  bond features, slot-major
    # wsT/wnT/weT: [A,2A]/[A,2A]/[E,2A] bf16  split, pre-transposed fc_full weight
    # b_ref:    [1, 2A]     f32   fc_full bias
    n, a = atom_ref.shape
    mn = nbrg_ref.shape[0]
    m = mn // n

    atom = atom_ref[...]

    # fc_full split into three MXU matmuls (same FLOPs as the concat form, no
    # materialized [N*M, 2A+E] `total` tensor, bf16 inputs / f32 accumulation).
    self_z = jnp.dot(atom.astype(jnp.bfloat16), wsT_ref[...],
                     preferred_element_type=jnp.float32)          # [N, 2A]
    nbr_z = jnp.dot(nbrg_ref[...], wnT_ref[...],
                    preferred_element_type=jnp.float32)           # [M*N, 2A]
    edge_z = jnp.dot(edge_ref[...], weT_ref[...],
                     preferred_element_type=jnp.float32)          # [M*N, 2A]

    # self contribution is identical for each neighbor slot -> tile along rows
    z = nbr_z + edge_z + jnp.concatenate([self_z] * m, axis=0) + b_ref[...]

    # BatchNorm1d(2A): training-mode batch statistics over all M*N edge rows
    mu = jnp.mean(z, axis=0, keepdims=True)
    var = jnp.mean((z - mu) ** 2, axis=0, keepdims=True)
    zh = (z - mu) * jax.lax.rsqrt(var + BN_EPS)

    nbr_filter = jax.nn.sigmoid(zh[:, :a])
    nbr_core = _softplus(zh[:, a:])
    gated = nbr_filter * nbr_core                                  # [M*N, A]

    # gated neighbor sum: slot-major layout -> sum of M contiguous [N, A] blocks
    # (replaces the dense [N, N*M] summation-matrix matmul).
    nbr_sumed = gated[0:n, :]
    for mm in range(1, m):
        nbr_sumed = nbr_sumed + gated[mm * n:(mm + 1) * n, :]

    # BatchNorm1d(A)
    mu2 = jnp.mean(nbr_sumed, axis=0, keepdims=True)
    var2 = jnp.mean((nbr_sumed - mu2) ** 2, axis=0, keepdims=True)
    nbr_sumed = (nbr_sumed - mu2) * jax.lax.rsqrt(var2 + BN_EPS)

    o_ref[...] = _softplus(atom + nbr_sumed)


def proj_kernel(x_ref, w1T_ref, b1_ref, w2T_ref, b2_ref, o_ref):
    # proj_head: Linear -> ReLU -> Linear, fused; weights pre-transposed bf16.
    h = (jnp.dot(x_ref[...].astype(jnp.bfloat16), w1T_ref[...],
                 preferred_element_type=jnp.float32) + b1_ref[...])
    h = jnp.maximum(h, 0.0)
    o_ref[...] = (jnp.dot(h.astype(jnp.bfloat16), w2T_ref[...],
                          preferred_element_type=jnp.float32) + b2_ref[...])


# ------------------------------ pallas_call wrappers ------------------------------

def embed(x, wT, b):
    n = x.shape[0]
    a = wT.shape[1]
    return pl.pallas_call(
        embed_kernel,
        out_shape=jax.ShapeDtypeStruct((n, a), jnp.float32),
        in_specs=[_vmem()] * 3,
        out_specs=_vmem(),
        compiler_params=_CP,
    )(x, wT, b.reshape(1, -1))


def cgcnn_conv(atom_fea, nbr_gathered, edge2d, wsT, wnT, weT, b):
    n, a = atom_fea.shape
    return pl.pallas_call(
        cgcnn_conv_kernel,
        out_shape=jax.ShapeDtypeStruct((n, a), jnp.float32),
        in_specs=[_vmem()] * 7,
        out_specs=_vmem(),
        compiler_params=_CP,
    )(atom_fea, nbr_gathered, edge2d, wsT, wnT, weT, b.reshape(1, -1))


def proj_head(pooled, w1T, b1, w2T, b2):
    c = pooled.shape[0]
    out_dim = w2T.shape[1]
    return pl.pallas_call(
        proj_kernel,
        out_shape=jax.ShapeDtypeStruct((c, out_dim), jnp.float32),
        in_specs=[_vmem()] * 5,
        out_specs=_vmem(),
        compiler_params=_CP,
    )(pooled, w1T, b1.reshape(1, -1), w2T, b2.reshape(1, -1))


# ------------------------------ parameters / forward ------------------------------

def _kaiming(key, out_f, in_f):
    # torch.nn.init.kaiming_normal_ (fan_in, relu gain) => std = sqrt(2 / fan_in)
    return jax.random.normal(key, (out_f, in_f), jnp.float32) * jnp.sqrt(2.0 / in_f)


def init_params(key, orig_atom_fea_len, nbr_fea_len, atom_fea_len, n_conv):
    keys = jax.random.split(key, 3 + n_conv)
    params = {
        "embed_w": _kaiming(keys[0], atom_fea_len, orig_atom_fea_len),
        "embed_b": jnp.zeros((atom_fea_len,), jnp.float32),
        "convs": [],
        "proj1_w": _kaiming(keys[1], atom_fea_len, atom_fea_len),
        "proj1_b": jnp.zeros((atom_fea_len,), jnp.float32),
        "proj2_w": _kaiming(keys[2], atom_fea_len, atom_fea_len),
        "proj2_b": jnp.zeros((atom_fea_len,), jnp.float32),
    }
    fan_in = 2 * atom_fea_len + nbr_fea_len
    for i in range(n_conv):
        params["convs"].append({
            "w": _kaiming(keys[3 + i], 2 * atom_fea_len, fan_in),
            "b": jnp.zeros((2 * atom_fea_len,), jnp.float32),
        })
    return params


def simclr_forward(params, atom_fea, nbr_fea, nbr_fea_idx, crystal_atom_idx):
    n, m = nbr_fea_idx.shape
    a = params["embed_w"].shape[0]

    # one-time layout prep (XLA, folded at jit time): bf16 pre-transposed weights,
    # slot-major bf16 edge features.  No dense sum/pool matrices, no `total` concat.
    embed_wT = params["embed_w"].T.astype(jnp.bfloat16)
    edge2d = jnp.swapaxes(nbr_fea, 0, 1).reshape(m * n, -1).astype(jnp.bfloat16)

    # encoder: Linear embedding
    x = embed(atom_fea, embed_wT, params["embed_b"])

    # encoder: n_conv gated graph-conv layers
    for cp in params["convs"]:
        w = cp["w"]
        wsT = w[:, :a].T.astype(jnp.bfloat16)          # self-feature block
        wnT = w[:, a:2 * a].T.astype(jnp.bfloat16)     # gathered-neighbor block
        weT = w[:, 2 * a:].T.astype(jnp.bfloat16)      # bond-feature block
        gathered = jnp.swapaxes(x[nbr_fea_idx], 0, 1).reshape(m * n, a)
        gathered = gathered.astype(jnp.bfloat16)
        x = cgcnn_conv(x, gathered, edge2d, wsT, wnT, weT, cp["b"])

    # per-crystal mean pooling: plain segment mean over the index map
    # (equal-size crystals; replaces the dense [C, N] pooling-matrix matmul).
    pooled = jnp.mean(x[crystal_atom_idx], axis=1)

    # proj_head: Linear -> ReLU -> Linear fused in one kernel
    return proj_head(pooled,
                     params["proj1_w"].T.astype(jnp.bfloat16), params["proj1_b"],
                     params["proj2_w"].T.astype(jnp.bfloat16), params["proj2_b"])


if __name__ == "__main__":
    ORIG_FEA, NBR_FEA_LEN, ATOM_FEA_LEN, N_CONV = 16, 8, 32, 2
    N_ATOMS, N_NBRS, N_CRYSTALS = 16, 8, 2

    key = jax.random.PRNGKey(0)
    k_param, k_atom, k_nbr, k_idx = jax.random.split(key, 4)

    params = init_params(k_param, ORIG_FEA, NBR_FEA_LEN, ATOM_FEA_LEN, N_CONV)

    atom_fea = jax.random.normal(k_atom, (N_ATOMS, ORIG_FEA), jnp.float32)
    nbr_fea = jax.random.normal(k_nbr, (N_ATOMS, N_NBRS, NBR_FEA_LEN), jnp.float32)
    nbr_fea_idx = jax.random.randint(k_idx, (N_ATOMS, N_NBRS), 0, N_ATOMS, jnp.int32)
    # crystal_atom_idx: 2 crystals with 8 atoms each (contiguous index maps)
    crystal_atom_idx = jnp.arange(N_ATOMS, dtype=jnp.int32).reshape(N_CRYSTALS, -1)

    fwd = jax.jit(simclr_forward)
    y = fwd(params, atom_fea, nbr_fea, nbr_fea_idx, crystal_atom_idx)
    y = jax.block_until_ready(y)

    assert y.shape == (N_CRYSTALS, ATOM_FEA_LEN), y.shape
    assert bool(jnp.all(jnp.isfinite(y)))
    print("KERNEL_OK")
</pallas_src>

<mosaic_0001>
module attributes {stable_mosaic.version = 11 : i64} {
  func.func @embed_kernel(%arg0: memref<16x16xf32, #tpu.memory_space<vmem>>, %arg1: memref<16x32xbf16, #tpu.memory_space<vmem>>, %arg2: memref<1x32xf32, #tpu.memory_space<vmem>>, %arg3: memref<16x32xf32, #tpu.memory_space<vmem>>) attributes {dimension_semantics = [], scalar_prefetch = 0 : i64, scratch_operands = 0 : i64, tpu.core_type = #tpu.core_type<tc>} {
    %c0 = arith.constant 0 : index
    %c0_0 = arith.constant 0 : index
    %0 = vector.load %arg0[%c0, %c0_0] : memref<16x16xf32, #tpu.memory_space<vmem>>, vector<16x16xf32>
    %1 = arith.truncf %0 : vector<16x16xf32> to vector<16x16xbf16>
    %c0_1 = arith.constant 0 : index
    %c0_2 = arith.constant 0 : index
    %2 = vector.load %arg1[%c0_1, %c0_2] : memref<16x32xbf16, #tpu.memory_space<vmem>>, vector<16x32xbf16>
    %cst = arith.constant dense<0.000000e+00> : vector<16x32xf32>
    %3 = tpu.matmul %1, %2, %cst {dimension_numbers = #tpu.dot_dimension_numbers<[1], [0], [0], [1], [0, 0, 1, 1], [], []>} : vector<16x16xbf16>, vector<16x32xbf16>, vector<16x32xf32> -> vector<16x32xf32>
    %c0_3 = arith.constant 0 : index
    %c0_4 = arith.constant 0 : index
    %4 = vector.load %arg2[%c0_3, %c0_4] : memref<1x32xf32, #tpu.memory_space<vmem>>, vector<1x32xf32>
    %5 = vector.broadcast %4 : vector<1x32xf32> to vector<16x32xf32>
    %6 = arith.addf %3, %5 : vector<16x32xf32>
    %c0_5 = arith.constant 0 : index
    %c0_6 = arith.constant 0 : index
    %7 = vector.load %arg3[%c0_5, %c0_6] : memref<16x32xf32, #tpu.memory_space<vmem>>, vector<16x32xf32>
    tpu.vector_store %arg3[%c0_5, %c0_6], %6 {strides = array<i32>} : memref<16x32xf32, #tpu.memory_space<vmem>>, vector<16x32xf32>,
    return
  }
}

module attributes {stable_mosaic.version = 11 : i64} {
  func.func @cgcnn_conv_kernel(%arg0: memref<16x32xf32, #tpu.memory_space<vmem>>, %arg1: memref<128x32xbf16, #tpu.memory_space<vmem>>, %arg2: memref<128x8xbf16, #tpu.memory_space<vmem>>, %arg3: memref<32x64xbf16, #tpu.memory_space<vmem>>, %arg4: memref<32x64xbf16, #tpu.memory_space<vmem>>, %arg5: memref<8x64xbf16, #tpu.memory_space<vmem>>, %arg6: memref<1x64xf32, #tpu.memory_space<vmem>>, %arg7: memref<16x32xf32, #tpu.memory_space<vmem>>) attributes {dimension_semantics = [], scalar_prefetch = 0 : i64, scratch_operands = 0 : i64, tpu.core_type = #tpu.core_type<tc>} {
    %c0 = arith.constant 0 : index
    %c0_0 = arith.constant 0 : index
    %0 = vector.load %arg0[%c0, %c0_0] : memref<16x32xf32, #tpu.memory_space<vmem>>, vector<16x32xf32>
    %1 = arith.truncf %0 : vector<16x32xf32> to vector<16x32xbf16>
    %c0_1 = arith.constant 0 : index
    %c0_2 = arith.constant 0 : index
    %2 = vector.load %arg3[%c0_1, %c0_2] : memref<32x64xbf16, #tpu.memory_space<vmem>>, vector<32x64xbf16>
    %cst = arith.constant dense<0.000000e+00> : vector<16x64xf32>
    %3 = tpu.matmul %1, %2, %cst {dimension_numbers = #tpu.dot_dimension_numbers<[1], [0], [0], [1], [0, 0, 1, 1], [], []>} : vector<16x32xbf16>, vector<32x64xbf16>, vector<16x64xf32> -> vector<16x64xf32>
    %c0_3 = arith.constant 0 : index
    %c0_4 = arith.constant 0 : index
    %4 = vector.load %arg1[%c0_3, %c0_4] : memref<128x32xbf16, #tpu.memory_space<vmem>>, vector<128x32xbf16>
    %c0_5 = arith.constant 0 : index
    %c0_6 = arith.constant 0 : index
    %5 = vector.load %arg4[%c0_5, %c0_6] : memref<32x64xbf16, #tpu.memory_space<vmem>>, vector<32x64xbf16>
    %cst_7 = arith.constant dense<0.000000e+00> : vector<128x64xf32>
    %6 = tpu.matmul %4, %5, %cst_7 {dimension_numbers = #tpu.dot_dimension_numbers<[1], [0], [0], [1], [0, 0, 1, 1], [], []>} : vector<128x32xbf16>, vector<32x64xbf16>, vector<128x64xf32> -> vector<128x64xf32>
    %c0_8 = arith.constant 0 : index
    %c0_9 = arith.constant 0 : index
    %7 = vector.load %arg2[%c0_8, %c0_9] : memref<128x8xbf16, #tpu.memory_space<vmem>>, vector<128x8xbf16>
    %c0_10 = arith.constant 0 : index
    %c0_11 = arith.constant 0 : index
    %8 = vector.load %arg5[%c0_10, %c0_11] : memref<8x64xbf16, #tpu.memory_space<vmem>>, vector<8x64xbf16>
    %cst_12 = arith.constant dense<0.000000e+00> : vector<128x64xf32>
    %9 = tpu.matmul %7, %8, %cst_12 {dimension_numbers = #tpu.dot_dimension_numbers<[1], [0], [0], [1], [0, 0, 1, 1], [], []>} : vector<128x8xbf16>, vector<8x64xbf16>, vector<128x64xf32> -> vector<128x64xf32>
    %10 = arith.addf %6, %9 : vector<128x64xf32>
    %11 = tpu.concatenate %3, %3, %3, %3, %3, %3, %3, %3 in 0 : vector<16x64xf32>, vector<16x64xf32>, vector<16x64xf32>, vector<16x64xf32>, vector<16x64xf32>, vector<16x64xf32>, vector<16x64xf32>, vector<16x64xf32> -> vector<128x64xf32>
    %12 = arith.addf %10, %11 : vector<128x64xf32>
    %c0_13 = arith.constant 0 : index
    %c0_14 = arith.constant 0 : index
    %13 = vector.load %arg6[%c0_13, %c0_14] : memref<1x64xf32, #tpu.memory_space<vmem>>, vector<1x64xf32>
    %14 = vector.broadcast %13 : vector<1x64xf32> to vector<128x64xf32>
    %15 = arith.addf %12, %14 : vector<128x64xf32>
    %cst_15 = arith.constant dense<0.000000e+00> : vector<64xf32>
    %16 = vector.multi_reduction <add>, %15, %cst_15 [0] : vector<128x64xf32> to vector<64xf32>
    %17 = vector.shape_cast %16 : vector<64xf32> to vector<1x64xf32>
    %cst_16 = arith.constant 1.280000e+02 : f32
    %18 = vector.broadcast %cst_16 : f32 to vector<1x64xf32>
    %19 = arith.divf %17, %18 : vector<1x64xf32>
    %20 = vector.broadcast %19 : vector<1x64xf32> to vector<128x64xf32>
    %21 = arith.subf %15, %20 : vector<128x64xf32>
    %22 = arith.mulf %21, %21 : vector<128x64xf32>
    %cst_17 = arith.constant dense<0.000000e+00> : vector<64xf32>
    %23 = vector.multi_reduction <add>, %22, %cst_17 [0] : vector<128x64xf32> to vector<64xf32>
    %24 = vector.shape_cast %23 : vector<64xf32> to vector<1x64xf32>
    %cst_18 = arith.constant 1.280000e+02 : f32
    %25 = vector.broadcast %cst_18 : f32 to vector<1x64xf32>
    %26 = arith.divf %24, %25 : vector<1x64xf32>
    %27 = vector.broadcast %19 : vector<1x64xf32> to vector<128x64xf32>
    %28 = arith.subf %15, %27 : vector<128x64xf32>
    %cst_19 = arith.constant 9.99999974E-6 : f32
    %29 = vector.broadcast %cst_19 : f32 to vector<1x64xf32>
    %30 = arith.addf %26, %29 : vector<1x64xf32>
    %31 = math.rsqrt %30 : vector<1x64xf32>
    %32 = vector.broadcast %31 : vector<1x64xf32> to vector<128x64xf32>
    %33 = arith.mulf %28, %32 : vector<128x64xf32>
    %34 = vector.extract_strided_slice %33 {offsets = [0, 0], sizes = [128, 32], strides = [1, 1]} : vector<128x64xf32> to vector<128x32xf32>
    %35 = arith.negf %34 : vector<128x32xf32>
    %36 = math.exp %35 : vector<128x32xf32>
    %cst_20 = arith.constant 1.000000e+00 : f32
    %37 = vector.broadcast %cst_20 : f32 to vector<128x32xf32>
    %38 = arith.addf %37, %36 : vector<128x32xf32>
    %39 = arith.divf %37, %38 : vector<128x32xf32>
    %40 = vector.extract_strided_slice %33 {offsets = [0, 32], sizes = [128, 32], strides = [1, 1]} : vector<128x64xf32> to vector<128x32xf32>
    %cst_21 = arith.constant 0.000000e+00 : f32
    %41 = vector.broadcast %cst_21 : f32 to vector<128x32xf32>
    %42 = arith.maximumf %40, %41 : vector<128x32xf32>
    %43 = vector.broadcast %cst_21 : f32 to vector<128x32xf32>
    %44 = arith.subf %40, %43 : vector<128x32xf32>
    %45 = arith.cmpf one, %44, %44 : vector<128x32xf32>
    %46 = vector.broadcast %cst_21 : f32 to vector<128x32xf32>
    %47 = arith.addf %40, %46 : vector<128x32xf32>
    %48 = math.absf %44 : vector<128x32xf32>
    %cst_22 = arith.constant 0.000000e+00 : f32
    %49 = vector.broadcast %cst_22 : f32 to vector<128x32xf32>
    %50 = arith.subf %49, %48 : vector<128x32xf32>
    %51 = math.exp %50 : vector<128x32xf32>
    %52 = math.log1p %51 : vector<128x32xf32>
    %53 = arith.addf %42, %52 : vector<128x32xf32>
    %54 = arith.select %45, %47, %53 : vector<128x32xi1>, vector<128x32xf32>
    %55 = arith.mulf %39, %54 : vector<128x32xf32>
    %56 = vector.extract_strided_slice %55 {offsets = [0, 0], sizes = [16, 32], strides = [1, 1]} : vector<128x32xf32> to vector<16x32xf32>
    %57 = vector.extract_strided_slice %55 {offsets = [16, 0], sizes = [16, 32], strides = [1, 1]} : vector<128x32xf32> to vector<16x32xf32>
    %58 = arith.addf %56, %57 : vector<16x32xf32>
    %59 = vector.extract_strided_slice %55 {offsets = [32, 0], sizes = [16, 32], strides = [1, 1]} : vector<128x32xf32> to vector<16x32xf32>
    %60 = arith.addf %58, %59 : vector<16x32xf32>
    %61 = vector.extract_strided_slice %55 {offsets = [48, 0], sizes = [16, 32], strides = [1, 1]} : vector<128x32xf32> to vector<16x32xf32>
    %62 = arith.addf %60, %61 : vector<16x32xf32>
    %63 = vector.extract_strided_slice %55 {offsets = [64, 0], sizes = [16, 32], strides = [1, 1]} : vector<128x32xf32> to vector<16x32xf32>
    %64 = arith.addf %62, %63 : vector<16x32xf32>
    %65 = vector.extract_strided_slice %55 {offsets = [80, 0], sizes = [16, 32], strides = [1, 1]} : vector<128x32xf32> to vector<16x32xf32>
    %66 = arith.addf %64, %65 : vector<16x32xf32>
    %67 = vector.extract_strided_slice %55 {offsets = [96, 0], sizes = [16, 32], strides = [1, 1]} : vector<128x32xf32> to vector<16x32xf32>
    %68 = arith.addf %66, %67 : vector<16x32xf32>
    %69 = vector.extract_strided_slice %55 {offsets = [112, 0], sizes = [16, 32], strides = [1, 1]} : vector<128x32xf32> to vector<16x32xf32>
    %70 = arith.addf %68, %69 : vector<16x32xf32>
    %cst_23 = arith.constant dense<0.000000e+00> : vector<32xf32>
    %71 = vector.multi_reduction <add>, %70, %cst_23 [0] : vector<16x32xf32> to vector<32xf32>
    %72 = vector.shape_cast %71 : vector<32xf32> to vector<1x32xf32>
    %cst_24 = arith.constant 1.600000e+01 : f32
    %73 = vector.broadcast %cst_24 : f32 to vector<1x32xf32>
    %74 = arith.divf %72, %73 : vector<1x32xf32>
    %75 = vector.broadcast %74 : vector<1x32xf32> to vector<16x32xf32>
    %76 = arith.subf %70, %75 : vector<16x32xf32>
    %77 = arith.mulf %76, %76 : vector<16x32xf32>
    %cst_25 = arith.constant dense<0.000000e+00> : vector<32xf32>
    %78 = vector.multi_reduction <add>, %77, %cst_25 [0] : vector<16x32xf32> to vector<32xf32>
    %79 = vector.shape_cast %78 : vector<32xf32> to vector<1x32xf32>
    %cst_26 = arith.constant 1.600000e+01 : f32
    %80 = vector.broadcast %cst_26 : f32 to vector<1x32xf32>
    %81 = arith.divf %79, %80 : vector<1x32xf32>
    %82 = vector.broadcast %74 : vector<1x32xf32> to vector<16x32xf32>
    %83 = arith.subf %70, %82 : vector<16x32xf32>
    %cst_27 = arith.constant 9.99999974E-6 : f32
    %84 = vector.broadcast %cst_27 : f32 to vector<1x32xf32>
    %85 = arith.addf %81, %84 : vector<1x32xf32>
    %86 = math.rsqrt %85 : vector<1x32xf32>
    %87 = vector.broadcast %86 : vector<1x32xf32> to vector<16x32xf32>
    %88 = arith.mulf %83, %87 : vector<16x32xf32>
    %89 = arith.addf %0, %88 : vector<16x32xf32>
    %cst_28 = arith.constant 0.000000e+00 : f32
    %90 = vector.broadcast %cst_28 : f32 to vector<16x32xf32>
    %91 = arith.maximumf %89, %90 : vector<16x32xf32>
    %92 = vector.broadcast %cst_28 : f32 to vector<16x32xf32>
    %93 = arith.subf %89, %92 : vector<16x32xf32>
    %94 = arith.cmpf one, %93, %93 : vector<16x32xf32>
    %95 = vector.broadcast %cst_28 : f32 to vector<16x32xf32>
    %96 = arith.addf %89, %95 : vector<16x32xf32>
    %97 = math.absf %93 : vector<16x32xf32>
    %cst_29 = arith.constant 0.000000e+00 : f32
    %98 = vector.broadcast %cst_29 : f32 to vector<16x32xf32>
    %99 = arith.subf %98, %97 : vector<16x32xf32>
    %100 = math.exp %99 : vector<16x32xf32>
    %101 = math.log1p %100 : vector<16x32xf32>
    %102 = arith.addf %91, %101 : vector<16x32xf32>
    %103 = arith.select %94, %96, %102 : vector<16x32xi1>, vector<16x32xf32>
    %c0_30 = arith.constant 0 : index
    %c0_31 = arith.constant 0 : index
    %104 = vector.load %arg7[%c0_30, %c0_31] : memref<16x32xf32, #tpu.memory_space<vmem>>, vector<16x32xf32>
    tpu.vector_store %arg7[%c0_30, %c0_31], %103 {strides = array<i32>} : memref<16x32xf32, #tpu.memory_space<vmem>>, vector<16x32xf32>,
    return
  }
}

module attributes {stable_mosaic.version = 11 : i64} {
  func.func @proj_kernel(%arg0: memref<2x32xf32, #tpu.memory_space<vmem>>, %arg1: memref<32x32xbf16, #tpu.memory_space<vmem>>, %arg2: memref<1x32xf32, #tpu.memory_space<vmem>>, %arg3: memref<32x32xbf16, #tpu.memory_space<vmem>>, %arg4: memref<1x32xf32, #tpu.memory_space<vmem>>, %arg5: memref<2x32xf32, #tpu.memory_space<vmem>>) attributes {dimension_semantics = [], scalar_prefetch = 0 : i64, scratch_operands = 0 : i64, tpu.core_type = #tpu.core_type<tc>} {
    %c0 = arith.constant 0 : index
    %c0_0 = arith.constant 0 : index
    %0 = vector.load %arg0[%c0, %c0_0] : memref<2x32xf32, #tpu.memory_space<vmem>>, vector<2x32xf32>
    %1 = arith.truncf %0 : vector<2x32xf32> to vector<2x32xbf16>
    %c0_1 = arith.constant 0 : index
    %c0_2 = arith.constant 0 : index
    %2 = vector.load %arg1[%c0_1, %c0_2] : memref<32x32xbf16, #tpu.memory_space<vmem>>, vector<32x32xbf16>
    %cst = arith.constant dense<0.000000e+00> : vector<2x32xf32>
    %3 = tpu.matmul %1, %2, %cst {dimension_numbers = #tpu.dot_dimension_numbers<[1], [0], [0], [1], [0, 0, 1, 1], [], []>} : vector<2x32xbf16>, vector<32x32xbf16>, vector<2x32xf32> -> vector<2x32xf32>
    %c0_3 = arith.constant 0 : index
    %c0_4 = arith.constant 0 : index
    %4 = vector.load %arg2[%c0_3, %c0_4] : memref<1x32xf32, #tpu.memory_space<vmem>>, vector<1x32xf32>
    %5 = vector.broadcast %4 : vector<1x32xf32> to vector<2x32xf32>
    %6 = arith.addf %3, %5 : vector<2x32xf32>
    %cst_5 = arith.constant 0.000000e+00 : f32
    %7 = vector.broadcast %cst_5 : f32 to vector<2x32xf32>
    %8 = arith.maximumf %6, %7 : vector<2x32xf32>
    %9 = arith.truncf %8 : vector<2x32xf32> to vector<2x32xbf16>
    %c0_6 = arith.constant 0 : index
    %c0_7 = arith.constant 0 : index
    %10 = vector.load %arg3[%c0_6, %c0_7] : memref<32x32xbf16, #tpu.memory_space<vmem>>, vector<32x32xbf16>
    %cst_8 = arith.constant dense<0.000000e+00> : vector<2x32xf32>
    %11 = tpu.matmul %9, %10, %cst_8 {dimension_numbers = #tpu.dot_dimension_numbers<[1], [0], [0], [1], [0, 0, 1, 1], [], []>} : vector<2x32xbf16>, vector<32x32xbf16>, vector<2x32xf32> -> vector<2x32xf32>
    %c0_9 = arith.constant 0 : index
    %c0_10 = arith.constant 0 : index
    %12 = vector.load %arg4[%c0_9, %c0_10] : memref<1x32xf32, #tpu.memory_space<vmem>>, vector<1x32xf32>
    %13 = vector.broadcast %12 : vector<1x32xf32> to vector<2x32xf32>
    %14 = arith.addf %11, %13 : vector<2x32xf32>
    %c0_11 = arith.constant 0 : index
    %c0_12 = arith.constant 0 : index
    %15 = vector.load %arg5[%c0_11, %c0_12] : memref<2x32xf32, #tpu.memory_space<vmem>>, vector<2x32xf32>
    tpu.vector_store %arg5[%c0_11, %c0_12], %14 {strides = array<i32>} : memref<2x32xf32, #tpu.memory_space<vmem>>, vector<2x32xf32>,
    return
  }
}

</mosaic_0001>

<bundles_post_ra>
// kernel: simclr_forward.4
= control target key start
LH: loop header
LB: loop body
LE: loop exit
PB: predicated region body
PF: predicated region fallthrough
CT: control target
= control target key end

     0   :  { %v99_v0 = vmov 0.0   ;;  %vm100_vm0 = vmmov 0   ;;  %vm33_vm1 = vcmask 130048   ;;  %vm78_vm2 = vcmask 261120   ;;  %s139_s1 = inlined_call_operand.vmem [shape: bf16[16,32], index: 1, kind: input, shape index: {}]   ;;  %s140_s0 = inlined_call_operand.vmem [shape: f32[16,16], index: 0, kind: input, shape index: {}]   ;;  %s141_s2 = inlined_call_operand.vmem [shape: f32[1,32], index: 2, kind: input, shape index: {}]   ;;  %s142_s3 = inlined_call_operand.vmem [shape: f32[16,32], index: 3, kind: output, shape index: {}]  }
   0x1   :  { %90 = vmatprep.subr.bf16.mxu0 %v99_v0  ;;  %v98_v1 = vld [vmem:[%s139_s1] sm:$0xff]   ;;  %92 = vmatprep.mubr.msk.bf16.mxu0 %vm100_vm0, %v99_v0  ;;  %v16_v3 = vld [vmem:[%s140_s0 + $0x8] sm:$0xff] }
   0x2   :  { %v15_v2 = vld [vmem:[%s140_s0] sm:$0xff]  ;;  %91 = vmatpush3.bf16.msra.mxu0 %v98_v1 }
   0x3   :  { %v17_v4 = vpack.c.bf16 %v16_v3, %v15_v2  ;;  %v85_v5 = vld [vmem:[%s141_s2] ss:$0 sm:$0xff] }
   0x5   :  { %93 = vmatmul.mubr.msk.bf16.vlgmr.msra.gmra.mrb[0].mxu0 %vm33_vm1, %v17_v4 }
  0xd8   :  { %v71_v6 = vpop.f32.mrb[0].mxu0 }
  0xd9   :  { %v72_v7 = vadd.f32 %v85_v5, %v71_v6  ;;  %v94_v8 = vpop.f32.mrb[1].mxu0 }
  0xda   :  { %v74_v9 = vpop.f32.mrb[2].mxu0 }
  0xdb   :  { %79 = vst.msk [vmem:[%s142_s3] sm:$0xff] %vm78_vm2, %v72_v7  ;;  %v75_v10 = vadd.f32 %v85_v5, %v74_v9  ;;  %v95_v11 = vpop.f32.mrb[3].mxu0 }
  0xdd   :  { %80 = vst.msk [vmem:[%s142_s3 + $0x8] sm:$0xff] %vm78_vm2, %v75_v10 }

// kernel: simclr_forward.5
= control target key start
LH: loop header
LB: loop body
LE: loop exit
PB: predicated region body
PF: predicated region fallthrough
CT: control target
= control target key end

     0   :  { %vm193_vm0 = vcmask 1043456   ;;  %vm168_vm1 = vcmask 64512   ;;  %v1492_v1 = vmov 0.0   ;;  %vm1493_vm2 = vmmov 0   ;;  %s2091_s5 = inlined_call_operand.vmem [shape: bf16[8,64], index: 5, kind: input, shape index: {}]   ;;  %s2092_s3 = inlined_call_operand.vmem [shape: bf16[32,64], index: 3, kind: input, shape index: {}]   ;;  %s2093_s2 = inlined_call_operand.vmem [shape: bf16[128,8], index: 2, kind: input, shape index: {}]   ;;  %s2094_s4 = inlined_call_operand.vmem [shape: bf16[32,64], index: 4, kind: input, shape index: {}]   ;;  %s2095_s0 = inlined_call_operand.vmem [shape: f32[16,32], index: 0, kind: input, shape index: {}]   ;;  %s2096_s1 = inlined_call_operand.vmem [shape: bf16[128,32], index: 1, kind: input, shape index: {}]   ;;  %s2097_s6 = inlined_call_operand.vmem [shape: f32[1,64], index: 6, kind: input, shape index: {}]   ;;  %s2098_s7 = inlined_call_operand.vmem [shape: f32[16,32], index: 7, kind: output, shape index: {}]  }
   0x1   :  { %v127_v0 = vld [vmem:[%s2091_s5] sm:$0xf]  ;;  %1261 = vmatprep.subr.bf16.mxu0 %v1492_v1  ;;  %1265 = vmatprep.mubr.msk.bf16.mxu0 %vm1493_vm2, %v1492_v1  ;;  %v1331_v4 = vld [vmem:[%s2093_s2 + $0x30] sm:$0xff]   ;;  %v1332_v5 = vld [vmem:[%s2093_s2 + $0x38] sm:$0xff]   ;;  %vm46_vm3 = vcmask 261120   ;;  %vm506_vm4 = vcmask 523264  }
   0x2   :  { %1326 = vmatprep.subr.msk.bf16.mxu1 %vm193_vm0, %v127_v0  ;;  %v195_v2 = vsel %vm193_vm0, %v127_v0, 0  ;;  %v1330_v3 = vld [vmem:[%s2092_s3] sm:$0xff]   ;;  %1283 = vmatprep.mubr.msk.bf16.mxu1 %vm168_vm1, %v1331_v4  ;;  %v1334_v7 = vld [vmem:[%s2092_s3 + $0x8] sm:$0xff]   ;;  %v1340_v15 = vld [vmem:[%s2096_s1 + $0x10] sm:$0xff]  }
   0x3   :  { %1308 = vmatpush3.bf16.msra.mxu1 %v195_v2  ;;  %1262 = vmatpush3.bf16.msra.mxu0 %v1330_v3  ;;  %v1333_v6 = vld [vmem:[%s2094_s4] sm:$0xff]   ;;  %v1335_v8 = vld [vmem:[%s2094_s4 + $0x8] sm:$0xff]   ;;  %v1342_v17 = vld [vmem:[%s2093_s2 + $0x10] sm:$0xff]  }
   0x4   :  { %1263 = vmatprep.subr.bf16.mxu0 %v1492_v1  ;;  %1287 = vmatprep.subr.bf16.mxu1 %v1333_v6  ;;  %v27_v9 = vld [vmem:[%s2095_s0] sm:$0xff]  ;;  %v28_v10 = vld [vmem:[%s2095_s0 + $0x8] sm:$0xff]  ;;  %v1341_v18 = vld [vmem:[%s2096_s1 + $0x18] sm:$0xff]  }
   0x5   :  { %v29_v11 = vpack.c.bf16 %v28_v10, %v27_v9  ;;  %v1336_v12 = vld [vmem:[%s2096_s1] sm:$0xff]   ;;  %v1337_v14 = vld [vmem:[%s2096_s1 + $0x8] sm:$0xff]   ;;  %v1343_v20 = vld [vmem:[%s2093_s2 + $0x18] sm:$0xff]  }
   0x6   :  { %1284 = vmatmul.mubr.msk.bf16.vlgmr.msra.gmra.mrb[0].mxu1 %vm168_vm1, %v1332_v5  ;;  %v1338_v13 = vld [vmem:[%s2093_s2] sm:$0xff]   ;;  %v1339_v16 = vld [vmem:[%s2093_s2 + $0x8] sm:$0xff]   ;;  %v1348_v23 = vld [vmem:[%s2096_s1 + $0x30] sm:$0xff]  }
   0x7   :  { %1288 = vmatpush3.bf16.msra.mxu1 %v1333_v6  ;;  %1264 = vmatpush3.bf16.msra.mxu0 %v1334_v7  ;;  %v1344_v19 = vld [vmem:[%s2096_s1 + $0x20] sm:$0xff]   ;;  %v1345_v22 = vld [vmem:[%s2096_s1 + $0x28] sm:$0xff]   ;;  %v1349_v25 = vld [vmem:[%s2096_s1 + $0x38] sm:$0xff]  }
   0x8   :  { %1289 = vmatprep.subr.bf16.mxu1 %v1335_v8  ;;  %1325 = vmatprep.subr.msk.bf16.mxu0 %vm193_vm0, %v127_v0  ;;  %v1346_v21 = vld [vmem:[%s2093_s2 + $0x20] sm:$0xff]   ;;  %v1347_v24 = vld [vmem:[%s2093_s2 + $0x28] sm:$0xff]  }
   0x9   :  { %1291 = vmatprep.mubr.msk.bf16.mxu1 %vm46_vm3, %v1336_v12  ;;  %v1632_v40 = vld [vmem:[%s2097_s6] ss:$0 sm:$0xff]  ;;  %s1494_s6 = smov 96  }
   0xa   :  { %1266 = vmatmul.mubr.msk.bf16.vlgmr.msra.gmra.mrb[0].mxu0 %vm46_vm3, %v29_v11 }
   0xb   :  { %1290 = vmatpush3.bf16.msra.mxu1 %v1335_v8  ;;  %1270 = vmatpush3.bf16.msra.mxu0 %v195_v2 }
   0xc   :  { %1271 = vmatprep.mubr.msk.bf16.mxu0 %vm168_vm1, %v1338_v13 }
   0xe   :  { %1292 = vmatmul.mubr.msk.bf16.vlgmr.msra.gmra.mrb[4].mxu1 %vm46_vm3, %v1337_v14 }
   0xf   :  { %1295 = vmatprep.mubr.msk.bf16.mxu1 %vm46_vm3, %v1340_v15 }
  0x12   :  { %1272 = vmatmul.mubr.msk.bf16.vlgmr.msra.gmra.mrb[4].mxu0 %vm168_vm1, %v1339_v16 }
  0x13   :  { %1275 = vmatprep.mubr.msk.bf16.mxu0 %vm168_vm1, %v1342_v17 }
  0x16   :  { %1296 = vmatmul.mubr.msk.bf16.gmra.mrb[8].mxu1 %vm46_vm3, %v1341_v18 }
  0x17   :  { %1299 = vmatprep.mubr.msk.bf16.mxu1 %vm46_vm3, %v1344_v19 }
  0x1a   :  { %1276 = vmatmul.mubr.msk.bf16.gmra.mrb[8].mxu0 %vm168_vm1, %v1343_v20 }
  0x1b   :  { %1279 = vmatprep.mubr.msk.bf16.mxu0 %vm168_vm1, %v1346_v21 }
  0x1e   :  { %1300 = vmatmul.mubr.msk.bf16.gmra.mrb[12].mxu1 %vm46_vm3, %v1345_v22 }
  0x1f   :  { %1303 = vmatprep.mubr.msk.bf16.mxu1 %vm46_vm3, %v1348_v23 }
  0x22   :  { %1280 = vmatmul.mubr.msk.bf16.gmra.mrb[12].mxu0 %vm168_vm1, %v1347_v24 }
  0x26   :  { %1304 = vmatmul.mubr.msk.bf16.gmra.mrb[0].mxu1 %vm46_vm3, %v1349_v25 }
  0xdd   :  { %v1624_v26 = vpop.f32.mrb[0].mxu0 }
  0xde   :  { %v1267_v27 = vpop.f32.mrb[1].mxu0 }
  0xdf   :  { %v1626_v28 = vpop.f32.mrb[2].mxu0 }
  0xe0   :  { %v1268_v29 = vpop.f32.mrb[3].mxu0 }
  0xe1   :  { %v1293_v30 = vpop.f32.mrb[4].mxu1 }
  0xe2   :  { %v404_v31 = vpop.f32.mrb[5].mxu1 }
  0xe3   :  { %v1294_v32 = vpop.f32.mrb[6].mxu1 }
  0xe4   :  { %v407_v33 = vpop.f32.mrb[7].mxu1 }
  0xe5   :  { %v1273_v34 = vpop.f32.mrb[4].mxu0 }
  0xe6   :  { %v413_v35 = vadd.f32 %v1293_v30, %v1273_v34  ;;  %v231_v36 = vpop.f32.mrb[5].mxu0 }
  0xe7   :  { %v405_v37 = vadd.f32 %v404_v31, %v231_v36  ;;  %v1274_v38 = vpop.f32.mrb[6].mxu0 }
  0xe8   :  { %v469_v39 = vadd.f32 %v413_v35, %v1624_v26  ;;  %v416_v41 = vadd.f32 %v1294_v32, %v1274_v38  ;;  %v234_v42 = vpop.f32.mrb[7].mxu0 }
  0xe9   :  { %v467_v43 = vadd.f32 %v405_v37, %v1624_v26  ;;  %v408_v44 = vadd.f32 %v407_v33, %v234_v42  ;;  %v1297_v45 = vpop.f32.mrb[8].mxu1 }
  0xea   :  { %v470_v46 = vadd.f32 %v416_v41, %v1626_v28  ;;  %v420_v47 = vpop.f32.mrb[9].mxu1  ;;  %v1641_v52 = vadd.f32 %v1632_v40, %v469_v39 }
  0xeb   :  { %v1637_v48 = vadd.f32 %v1632_v40, %v467_v43  ;;  %v468_v49 = vadd.f32 %v408_v44, %v1626_v28  ;;  %v1298_v50 = vpop.f32.mrb[10].mxu1 }
  0xec   :  { %v423_v51 = vpop.f32.mrb[11].mxu1  ;;  %v1649_v58 = vadd.f32 %v1632_v40, %v470_v46  ;;  %v510_v2 = vsel %vm506_vm4, %v1641_v52, 0.0 }
  0xed   :  { %v1644_v53 = vadd.f32 %v1632_v40, %v468_v49  ;;  %v1277_v54 = vpop.f32.mrb[8].mxu0  ;;  %v507_v57 = vsel %vm506_vm4, %v1637_v48, 0.0 }
  0xee   :  { %v429_v55 = vadd.f32 %v1297_v45, %v1277_v54  ;;  %v247_v56 = vpop.f32.mrb[9].mxu0  ;;  %v512_v9 = vsel %vm506_vm4, %v1649_v58, 0.0 }
  0xef   :  { %v508_v59 = vsel %vm506_vm4, %v1644_v53, 0.0  ;;  %v421_v60 = vadd.f32 %v420_v47, %v247_v56  ;;  %v1278_v61 = vpop.f32.mrb[10].mxu0 }
  0xf0   :  { %v509_v62 = vadd.f32 %v508_v59, %v507_v57  ;;  %v473_v63 = vadd.f32 %v429_v55, %v1624_v26  ;;  %v432_v0 = vadd.f32 %v1298_v50, %v1278_v61  ;;  %v250_v1 = vpop.f32.mrb[11].mxu0 }
  0xf1   :  { %v471_v3 = vadd.f32 %v421_v60, %v1624_v26  ;;  %v424_v4 = vadd.f32 %v423_v51, %v250_v1  ;;  %v1301_v5 = vpop.f32.mrb[12].mxu1 }
  0xf2   :  { %v511_v6 = vadd.f32 %v510_v2, %v509_v62  ;;  %v474_v7 = vadd.f32 %v432_v0, %v1626_v28  ;;  %v436_v8 = vpop.f32.mrb[13].mxu1  ;;  %v1665_v15 = vadd.f32 %v1632_v40, %v473_v63 }
  0xf3   :  { %v1661_v10 = vadd.f32 %v1632_v40, %v471_v3  ;;  %v472_v11 = vadd.f32 %v424_v4, %v1626_v28  ;;  %v1302_v12 = vpop.f32.mrb[14].mxu1 }
  0xf4   :  { %v513_v13 = vadd.f32 %v512_v9, %v511_v6  ;;  %v439_v14 = vpop.f32.mrb[15].mxu1  ;;  %v497_v22 = vadd.f32 %v1632_v40, %v474_v7  ;;  %v518_v32 = vsel %vm506_vm4, %v1665_v15, 0.0 }
  0xf5   :  { %v514_v16 = vsel %vm506_vm4, %v1661_v10, 0.0  ;;  %v1670_v17 = vadd.f32 %v1632_v40, %v472_v11  ;;  %v1281_v18 = vpop.f32.mrb[12].mxu0 }
  0xf6   :  { %v515_v19 = vadd.f32 %v514_v16, %v513_v13  ;;  %v445_v20 = vadd.f32 %v1301_v5, %v1281_v18  ;;  %v263_v21 = vpop.f32.mrb[13].mxu0  ;;  %v520_v41 = vsel %vm506_vm4, %v497_v22, 0.0 }
  0xf7   :  { %v516_v23 = vsel %vm506_vm4, %v1670_v17, 0.0  ;;  %v437_v24 = vadd.f32 %v436_v8, %v263_v21  ;;  %v1282_v25 = vpop.f32.mrb[14].mxu0 }
  0xf8   :  { %v517_v27 = vadd.f32 %v516_v23, %v515_v19  ;;  %v477_v29 = vadd.f32 %v445_v20, %v1624_v26  ;;  %v448_v30 = vadd.f32 %v1302_v12, %v1282_v25  ;;  %v266_v31 = vpop.f32.mrb[15].mxu0 }
  0xf9   :  { %v475_v33 = vadd.f32 %v437_v24, %v1624_v26  ;;  %v440_v34 = vadd.f32 %v439_v14, %v266_v31  ;;  %v1305_v35 = vpop.f32.mrb[0].mxu1 }
  0xfa   :  { %v519_v36 = vadd.f32 %v518_v32, %v517_v27  ;;  %v478_v37 = vadd.f32 %v448_v30, %v1626_v28  ;;  %v481_v38 = vadd.f32 %v1305_v35, %v1624_v26  ;;  %v452_v39 = vpop.f32.mrb[1].mxu1  ;;  %v500_v49 = vadd.f32 %v1632_v40, %v477_v29 }
  0xfb   :  { %v498_v42 = vadd.f32 %v1632_v40, %v475_v33  ;;  %v476_v43 = vadd.f32 %v440_v34, %v1626_v28  ;;  %v479_v44 = vadd.f32 %v452_v39, %v1624_v26  ;;  %v1306_v45 = vpop.f32.mrb[2].mxu1 }
  0xfc   :  { %v521_v46 = vadd.f32 %v520_v41, %v519_v36  ;;  %v455_v47 = vpop.f32.mrb[3].mxu1  ;;  %v482_v54 = vadd.f32 %v1306_v45, %v1626_v28  ;;  %v501_v57 = vadd.f32 %v1632_v40, %v478_v37  ;;  %v526_v26 = vsel %vm506_vm4, %v500_v49, 0.0 }
  0xfd   :  { %v522_v50 = vsel %vm506_vm4, %v498_v42, 0.0  ;;  %v499_v51 = vadd.f32 %v1632_v40, %v476_v43  ;;  %v480_v56 = vadd.f32 %v455_v47, %v1626_v28  ;;  %v502_v61 = vadd.f32 %v1632_v40, %v479_v44 }
  0xfe   :  { %v523_v55 = vadd.f32 %v522_v50, %v521_v46  ;;  %v528_v63 = vsel %vm506_vm4, %v501_v57, 0.0  ;;  %v504_v2 = vadd.f32 %v1632_v40, %v481_v38  ;;  %v505_v4 = vadd.f32 %v1632_v40, %v482_v54 }
  0xff   :  { %v524_v59 = vsel %vm506_vm4, %v499_v51, 0.0  ;;  %v503_v0 = vadd.f32 %v1632_v40, %v480_v56  ;;  %v530_v3 = vsel %vm506_vm4, %v502_v61, 0.0 }
 0x100   :  { %v525_v60 = vadd.f32 %v524_v59, %v523_v55  ;;  %v534_v7 = vsel %vm506_vm4, %v504_v2, 0.0  ;;  %v536_v9 = vsel %vm506_vm4, %v505_v4, 0.0 }
 0x101   :  { %v532_v5 = vsel %vm506_vm4, %v503_v0, 0.0 }
 0x102   :  { %v527_v62 = vadd.f32 %v526_v26, %v525_v60 }
 0x104   :  { %v529_v1 = vadd.f32 %v528_v63, %v527_v62 }
 0x106   :  { %v531_v28 = vadd.f32 %v530_v3, %v529_v1 }
 0x108   :  { %v533_v6 = vadd.f32 %v532_v5, %v531_v28 }
 0x10a   :  { %v535_v8 = vadd.f32 %v534_v7, %v533_v6 }
 0x10c   :  { %v537_v11 = vadd.f32 %v536_v9, %v535_v8 }
 0x10e   :  { %v538_v12 = vrot.slane %v537_v11, 4 }
 0x110   :  { %v539_v13 = vadd.f32 %v538_v12, %v537_v11 }
 0x112   :  { %v540_v14 = vrot.slane %v539_v13, 2 }
 0x114   :  { %v541_v16 = vadd.f32 %v540_v14, %v539_v13 }
 0x116   :  { %v542_v18 = vrot.slane %v541_v16, 1 }
 0x118   :  { %v543_v19 = vadd.f32 %v542_v18, %v541_v16 }
 0x11a   :  { %v545_v20 = vmul.f32 0.0078125, %v543_v19 }
 0x11c   :  { %v1703_v21 = vsub.f32 %v1637_v48, %v545_v20  ;;  %v1706_v40 = vsub.f32 %v1644_v53, %v545_v20  ;;  %v1709_v23 = vsub.f32 %v1641_v52, %v545_v20  ;;  %v1712_v24 = vsub.f32 %v1649_v58, %v545_v20 }
 0x11d   :  { %v1715_v25 = vsub.f32 %v1661_v10, %v545_v20  ;;  %v1718_v27 = vsub.f32 %v1670_v17, %v545_v20  ;;  %v1721_v29 = vsub.f32 %v1665_v15, %v545_v20  ;;  %v1723_v48 = vsub.f32 %v497_v22, %v545_v20 }
 0x11e   :  { %v1725_v30 = vsub.f32 %v498_v42, %v545_v20  ;;  %v1727_v53 = vsub.f32 %v499_v51, %v545_v20  ;;  %v1729_v52 = vsub.f32 %v500_v49, %v545_v20  ;;  %v1731_v31 = vsub.f32 %v501_v57, %v545_v20 }
 0x11f   :  { %v1733_v58 = vsub.f32 %v502_v61, %v545_v20  ;;  %v559_v10 = vsub.f32 %v503_v0, %v545_v20  ;;  %v1735_v32 = vsub.f32 %v504_v2, %v545_v20  ;;  %v1737_v17 = vsub.f32 %v505_v4, %v545_v20 }
 0x120   :  { %v562_v15 = vmul.f32 %v1703_v21, %v1703_v21  ;;  %v563_v22 = vmul.f32 %v1706_v40, %v1706_v40  ;;  %v564_v33 = vmul.f32 %v1709_v23, %v1709_v23  ;;  %v571_v34 = vmul.f32 %v1727_v53, %v1727_v53 }
 0x121   :  { %v575_v35 = vmul.f32 %v559_v10, %v559_v10  ;;  %v565_v36 = vmul.f32 %v1712_v24, %v1712_v24  ;;  %v566_v41 = vmul.f32 %v1715_v25, %v1715_v25  ;;  %v567_v46 = vmul.f32 %v1718_v27, %v1718_v27 }
 0x122   :  { %v578_v37 = vsel %vm506_vm4, %v562_v15, 0.0  ;;  %v579_v38 = vsel %vm506_vm4, %v563_v22, 0.0  ;;  %v581_v42 = vsel %vm506_vm4, %v564_v33, 0.0  ;;  %v595_v43 = vsel %vm506_vm4, %v571_v34, 0.0 }
 0x123   :  { %v580_v39 = vadd.f32 %v579_v38, %v578_v37  ;;  %v603_v45 = vsel %vm506_vm4, %v575_v35, 0.0  ;;  %v583_v47 = vsel %vm506_vm4, %v565_v36, 0.0  ;;  %v568_v50 = vmul.f32 %v1721_v29, %v1721_v29 }
 0x124   :  { %v585_v51 = vsel %vm506_vm4, %v566_v41, 0.0  ;;  %v569_v55 = vmul.f32 %v1723_v48, %v1723_v48  ;;  %v587_v56 = vsel %vm506_vm4, %v567_v46, 0.0  ;;  %v570_v59 = vmul.f32 %v1725_v30, %v1725_v30 }
 0x125   :  { %v582_v44 = vadd.f32 %v581_v42, %v580_v39  ;;  %v589_v60 = vsel %vm506_vm4, %v568_v50, 0.0  ;;  %v572_v63 = vmul.f32 %v1729_v52, %v1729_v52  ;;  %v573_v2 = vmul.f32 %v1731_v31, %v1731_v31 }
 0x126   :  { %v591_v61 = vsel %vm506_vm4, %v569_v55, 0.0  ;;  %v593_v0 = vsel %vm506_vm4, %v570_v59, 0.0  ;;  %v574_v28 = vmul.f32 %v1733_v58, %v1733_v58  ;;  %v576_v8 = vmul.f32 %v1735_v32, %v1735_v32 }
 0x127   :  { %v584_v49 = vadd.f32 %v583_v47, %v582_v44  ;;  %v597_v4 = vsel %vm506_vm4, %v572_v63, 0.0  ;;  %v599_v6 = vsel %vm506_vm4, %v573_v2, 0.0  ;;  %v577_v12 = vmul.f32 %v1737_v17, %v1737_v17 }
 0x128   :  { %v601_v9 = vsel %vm506_vm4, %v574_v28, 0.0  ;;  %v605_v14 = vsel %vm506_vm4, %v576_v8, 0.0 }
 0x129   :  { %v586_v54 = vadd.f32 %v585_v51, %v584_v49  ;;  %v607_v18 = vsel %vm506_vm4, %v577_v12, 0.0 }
 0x12b   :  { %v588_v57 = vadd.f32 %v587_v56, %v586_v54 }
 0x12d   :  { %v590_v26 = vadd.f32 %v589_v60, %v588_v57 }
 0x12f   :  { %v592_v62 = vadd.f32 %v591_v61, %v590_v26 }
 0x131   :  { %v594_v1 = vadd.f32 %v593_v0, %v592_v62 }
 0x133   :  { %v596_v3 = vadd.f32 %v595_v43, %v594_v1 }
 0x135   :  { %v598_v5 = vadd.f32 %v597_v4, %v596_v3 }
 0x137   :  { %v600_v7 = vadd.f32 %v599_v6, %v598_v5 }
 0x139   :  { %v602_v11 = vadd.f32 %v601_v9, %v600_v7 }
 0x13b   :  { %v604_v13 = vadd.f32 %v603_v45, %v602_v11 }
 0x13d   :  { %v606_v16 = vadd.f32 %v605_v14, %v604_v13 }
 0x13f   :  { %v608_v19 = vadd.f32 %v607_v18, %v606_v16 }
 0x141   :  { %v609_v20 = vrot.slane %v608_v19, 4 }
 0x143   :  { %v610_v15 = vadd.f32 %v609_v20, %v608_v19 }
 0x145   :  { %v611_v22 = vrot.slane %v610_v15, 2 }
 0x147   :  { %v612_v33 = vadd.f32 %v611_v22, %v610_v15 }
 0x149   :  { %v613_v34 = vrot.slane %v612_v33, 1 }
 0x14b   :  { %v614_v35 = vadd.f32 %v613_v34, %v612_v33 }
 0x14d   :  { %v615_v36 = vmul.f32 0.0078125, %v614_v35 }
 0x14f   :  { %v616_v37 = vadd.f32 1e-05, %v615_v36 }
 0x151   :  { %1350 = vrsqrt.f32 %v616_v37 }
 0x15b   :  { %v1785_v38 = vpop.eup %1350 }
 0x15c   :  { %v1788_v39 = vmul.f32 %v1785_v38, %v559_v10  ;;  %v1792_v41 = vmul.f32 %v1785_v38, %v1709_v23  ;;  %v1796_v42 = vmul.f32 %v1785_v38, %v1703_v21  ;;  %v1800_v43 = vmul.f32 %v1785_v38, %v1712_v24 }
 0x15d   :  { %v1804_v44 = vmul.f32 %v1785_v38, %v1706_v40  ;;  %v1808_v10 = vmul.f32 %v1785_v38, %v1718_v27  ;;  %v1812_v23 = vmul.f32 %v1785_v38, %v1715_v25  ;;  %v1816_v21 = vmul.f32 %v1785_v38, %v1723_v48 }
 0x15e   :  { %v780_v45 = vand.u32 2147483647, %v1792_v41  ;;  %v778_v24 = vand.u32 2147483647, %v1796_v42  ;;  %v781_v40 = vand.u32 2147483647, %v1800_v43  ;;  %v1828_v63 = vmul.f32 %v1785_v38, %v1721_v29 }
 0x15f   :  { %v779_v49 = vand.u32 2147483647, %v1804_v44  ;;  %v791_v27 = vand.u32 2147483647, %v1788_v39  ;;  %v783_v55 = vand.u32 2147483647, %v1808_v10  ;;  %v1832_v1 = vmul.f32 %v1785_v38, %v1727_v53 }
 0x160   :  { %v796_v46 = vsub.f32 0.0, %v780_v45  ;;  %v794_v47 = vsub.f32 0.0, %v778_v24  ;;  %v797_v51 = vsub.f32 0.0, %v781_v40  ;;  %v782_v59 = vand.u32 2147483647, %v1812_v23 }
 0x161   :  { %v795_v54 = vsub.f32 0.0, %v779_v49  ;;  %v799_v57 = vsub.f32 0.0, %v783_v55  ;;  %v807_v60 = vsub.f32 0.0, %v791_v27  ;;  %v785_v26 = vand.u32 2147483647, %v1816_v21 }
 0x162   :  { %v814_v50 = vmul.f32 1.442695, %v796_v46  ;;  %v810_v25 = vmul.f32 1.442695, %v794_v47  ;;  %v816_v48 = vmul.f32 1.442695, %v797_v51  ;;  %v1838_v29 = vmul.f32 %v1785_v38, %v1725_v30 }
 0x163   :  { %v812_v56 = vmul.f32 1.442695, %v795_v54  ;;  %v820_v61 = vmul.f32 1.442695, %v799_v57  ;;  %v798_v62 = vsub.f32 0.0, %v782_v59  ;;  %v801_v0 = vsub.f32 0.0, %v785_v26 }
 0x164   :  { %1352 = vpow2.f32 %v814_v50  ;;  %v784_v28 = vand.u32 2147483647, %v1828_v63  ;;  %v836_v4 = vmul.f32 1.442695, %v807_v60  ;;  %v787_v5 = vand.u32 2147483647, %v1832_v1 }
 0x165   :  { %1354 = vpow2.f32 %v810_v25  ;;  %v818_v2 = vmul.f32 1.442695, %v798_v62  ;;  %v824_v3 = vmul.f32 1.442695, %v801_v0  ;;  %v732_v8 = vmax.f32 %v1792_v41, 0.0 }
 0x166   :  { %1356 = vpow2.f32 %v816_v48  ;;  %v800_v6 = vsub.f32 0.0, %v784_v28  ;;  %v803_v7 = vsub.f32 0.0, %v787_v5  ;;  %v730_v53 = vmax.f32 %v1796_v42, 0.0 }
 0x167   :  { %1358 = vpow2.f32 %v812_v56  ;;  %v733_v9 = vmax.f32 %v1800_v43, 0.0  ;;  %v731_v13 = vmax.f32 %v1804_v44, 0.0  ;;  %v735_v14 = vmax.f32 %v1808_v10, 0.0 }
 0x168   :  { %1360 = vpow2.f32 %v820_v61  ;;  %v822_v11 = vmul.f32 1.442695, %v800_v6  ;;  %v828_v16 = vmul.f32 1.442695, %v803_v7  ;;  %v734_v30 = vmax.f32 %v1812_v23, 0.0 }
 0x169   :  { %1362 = vpow2.f32 %v818_v2  ;;  %v786_v20 = vand.u32 2147483647, %v1838_v29  ;;  %v1849_v34 = vmul.f32 %v1785_v38, %v1731_v31  ;;  %v737_v40 = vmax.f32 %v1816_v21, 0.0 }
 0x16a   :  { %1364 = vpow2.f32 %v824_v3  ;;  %v736_v47 = vmax.f32 %v1828_v63, 0.0  ;;  %v1857_v31 = vmul.f32 %v1785_v38, %v1729_v52  ;;  %vm748_vm6 = vcmp.ne.f32.partialorder %v1792_v41, %v1792_v41 }
 0x16b   :  { %1366 = vpow2.f32 %v836_v4  ;;  %v1853_v27 = vsub.f32 0.0, %v786_v20  ;;  %v789_v55 = vand.u32 2147483647, %v1849_v34  ;;  %vm746_vm8 = vcmp.ne.f32.partialorder %v1796_v42, %v1796_v42 }
 0x16c   :  { %1368 = vpow2.f32 %v822_v11  ;;  %vm749_vm12 = vcmp.ne.f32.partialorder %v1800_v43, %v1800_v43  ;;  %vm747_vm13 = vcmp.ne.f32.partialorder %v1804_v44, %v1804_v44  ;;  %vm751_vm15 = vcmp.ne.f32.partialorder %v1808_v10, %v1808_v10 }
 0x16d   :  { %1370 = vpow2.f32 %v828_v16  ;;  %vm750_vm0 = vcmp.ne.f32.partialorder %v1812_v23, %v1812_v23 }
 0x16e   :  { %v1353_v12 = vpop.eup %1352 }
 0x16f   :  { %v1355_v18 = vpop.eup %1354  ;;  %v860_v19 = vadd.f32 1.0, %v1353_v12  ;;  %v863_v22 = vmul.f32 -0.5, %v1353_v12  ;;  %v866_v36 = vand.u32 2147483647, %v1353_v12 }
 0x170   :  { %v1357_v15 = vpop.eup %1356  ;;  %v842_v33 = vadd.f32 1.0, %v1355_v18  ;;  %v845_v37 = vmul.f32 -0.5, %v1355_v18  ;;  %v848_v25 = vand.u32 2147483647, %v1355_v18 }
 0x171   :  { %v1359_v35 = vpop.eup %1358  ;;  %1372 = vlog2.f32 %v860_v19  ;;  %v869_v45 = vadd.f32 1.0, %v1357_v15  ;;  %v872_v46 = vmul.f32 -0.5, %v1357_v15  ;;  %v864_v51 = vadd.f32 1.0, %v863_v22 }
 0x172   :  { %v1361_v24 = vpop.eup %1360  ;;  %1374 = vlog2.f32 %v842_v33  ;;  %v851_v49 = vadd.f32 1.0, %v1359_v35  ;;  %v854_v54 = vmul.f32 -0.5, %v1359_v35  ;;  %vm1862_vm5 = vcmp.lt.f32.partialorder %v866_v36, 0.0004427343 }
 0x173   :  { %1376 = vlog2.f32 %v869_v45  ;;  %v1363_v50 = vpop.eup %1362  ;;  %v846_v57 = vadd.f32 1.0, %v845_v37  ;;  %v887_v59 = vadd.f32 1.0, %v1361_v24  ;;  %v890_v60 = vmul.f32 -0.5, %v1361_v24 }
 0x174   :  { %v1860_v48 = vpop.eup %1364  ;;  %1378 = vlog2.f32 %v851_v49  ;;  %v873_v26 = vadd.f32 1.0, %v872_v46  ;;  %v875_v61 = vand.u32 2147483647, %v1357_v15  ;;  %v855_v52 = vadd.f32 1.0, %v854_v54 }
 0x175   :  { %v857_v62 = vand.u32 2147483647, %v1359_v35  ;;  %1380 = vlog2.f32 %v887_v59  ;;  %v893_v0 = vand.u32 2147483647, %v1361_v24  ;;  %v878_v2 = vadd.f32 1.0, %v1363_v50  ;;  %v1866_v28 = vpop.eup %1366 }
 0x176   :  { %v881_v3 = vmul.f32 -0.5, %v1363_v50  ;;  %v865_v4 = vmul.f32 %v1353_v12, %v864_v51  ;;  %vm1870_vm7 = vcmp.lt.f32.partialorder %v848_v25, 0.0004427343  ;;  %v891_v6 = vadd.f32 1.0, %v890_v60  ;;  %v1875_v11 = vpop.eup %1368 }
 0x177   :  { %v905_v7 = vadd.f32 1.0, %v1860_v48  ;;  %v847_v16 = vmul.f32 %v1355_v18, %v846_v57  ;;  %1382 = vlog2.f32 %v878_v2  ;;  %v884_v20 = vand.u32 2147483647, %v1363_v50  ;;  %v1879_v22 = vpop.eup %1370 }
 0x178   :  { %v882_v19 = vadd.f32 1.0, %v881_v3  ;;  %vm1881_vm9 = vcmp.lt.f32.partialorder %v875_v61, 0.0004427343  ;;  %v908_v33 = vmul.f32 -0.5, %v1860_v48  ;;  %v896_v36 = vadd.f32 1.0, %v1875_v11 }
 0x179   :  { %1384 = vlog2.f32 %v905_v7  ;;  %v874_v45 = vmul.f32 %v1357_v15, %v873_v26  ;;  %v856_v46 = vmul.f32 %v1359_v35, %v855_v52  ;;  %vm1887_vm10 = vcmp.lt.f32.partialorder %v857_v62, 0.0004427343 }
 0x17a   :  { %vm1891_vm11 = vcmp.lt.f32.partialorder %v893_v0, 0.0004427343  ;;  %v892_v54 = vmul.f32 %v1361_v24, %v891_v6  ;;  %1386 = vlog2.f32 %v896_v36  ;;  %v923_v57 = vadd.f32 1.0, %v1879_v22 }
 0x17b   :  { %v1373_v37 = vpop.eup %1372  ;;  %v883_v35 = vmul.f32 %v1363_v50, %v882_v19  ;;  %vm1900_vm14 = vcmp.lt.f32.partialorder %v884_v20, 0.0004427343  ;;  %v911_v26 = vand.u32 2147483647, %v1860_v48  ;;  %v909_v24 = vadd.f32 1.0, %v908_v33 }
 0x17c   :  { %v1375_v51 = vpop.eup %1374  ;;  %v862_v25 = vmul.f32 0.6931472, %v1373_v37  ;;  %1388 = vlog2.f32 %v923_v57  ;;  %v899_v50 = vmul.f32 -0.5, %v1875_v11  ;;  %v902_v3 = vand.u32 2147483647, %v1875_v11 }
 0x17d   :  { %v1377_v59 = vpop.eup %1376  ;;  %v844_v15 = vmul.f32 0.6931472, %v1375_v51  ;;  %v926_v7 = vmul.f32 -0.5, %v1879_v22  ;;  %vm1928_vm1 = vcmp.lt.f32.partialorder %v911_v26, 0.0004427343  ;;  %v910_v33 = vmul.f32 %v1860_v48, %v909_v24 }
 0x17e   :  { %v868_v61 = vsel %vm1862_vm5, %v865_v4, %v862_v25  ;;  %v871_v52 = vmul.f32 0.6931472, %v1377_v59  ;;  %v1379_v62 = vpop.eup %1378  ;;  %v826_v19 = vmul.f32 1.442695, %v1853_v27  ;;  %v900_v37 = vadd.f32 1.0, %v899_v50 }
 0x17f   :  { %v988_v0 = vadd.f32 %v868_v61, %v732_v8  ;;  %v850_v2 = vsel %vm1870_vm7, %v847_v16, %v844_v15  ;;  %v853_v4 = vmul.f32 0.6931472, %v1379_v62  ;;  %v1381_v8 = vpop.eup %1380  ;;  %v788_v57 = vand.u32 2147483647, %v1857_v31 }
 0x180   :  { %v986_v6 = vadd.f32 %v850_v2, %v730_v53  ;;  %v877_v56 = vsel %vm1881_vm9, %v874_v45, %v871_v52  ;;  %v889_v12 = vmul.f32 0.6931472, %v1381_v8  ;;  %1390 = vpow2.f32 %v826_v19 }
 0x181   :  { %v1004_v5 = vsel %vm748_vm6, %v1792_v41, %v988_v0  ;;  %v989_v16 = vadd.f32 %v877_v56, %v733_v9  ;;  %v859_v9 = vsel %vm1887_vm10, %v856_v46, %v853_v4  ;;  %v1383_v36 = vpop.eup %1382  ;;  %v805_v45 = vsub.f32 0.0, %v789_v55 }
 0x182   :  { %1038 = vrot.lane.b32.xlu1 %v1004_v5, %s1494_s6  ;;  %v1002_v20 = vsel %vm746_vm8, %v1796_v42, %v986_v6  ;;  %v987_v27 = vadd.f32 %v859_v9, %v731_v13  ;;  %v895_v25 = vsel %vm1891_vm11, %v892_v54, %v889_v12  ;;  %v880_v49 = vmul.f32 0.6931472, %v1383_v36 }
 0x183   :  { %1034 = vrot.lane.b32.xlu0 %v1002_v20, %s1494_s6  ;;  %v1385_v51 = vpop.eup %1384  ;;  %v927_v46 = vadd.f32 1.0, %v926_v7  ;;  %v1005_v48 = vsel %vm749_vm12, %v1800_v43, %v989_v16  ;;  %v991_v13 = vadd.f32 %v895_v25, %v735_v14  ;;  %v832_v15 = vmul.f32 1.442695, %v805_v45 }
 0x184   :  { %v907_v59 = vmul.f32 0.6931472, %v1385_v51  ;;  %v1387_v26 = vpop.eup %1386  ;;  %v1003_v55 = vsel %vm747_vm13, %v1804_v44, %v987_v27  ;;  %v886_v18 = vsel %vm1900_vm14, %v883_v35, %v880_v49  ;;  %v929_v54 = vand.u32 2147483647, %v1879_v22 }
 0x185   :  { %v804_v61 = vsub.f32 0.0, %v788_v57  ;;  %v990_v14 = vadd.f32 %v886_v18, %v734_v30  ;;  %v898_v24 = vmul.f32 0.6931472, %v1387_v26  ;;  %v901_v62 = vmul.f32 %v1875_v11, %v900_v37 }
 0x186   :  { %1040 = vrot.lane.b32.xlu1 %v1005_v48, %s1494_s6  ;;  %v913_v52 = vsel %vm1928_vm1, %v910_v33, %v907_v59  ;;  %v1389_v0 = vpop.eup %1388  ;;  %vm903_vm2 = vcmp.lt.f32.partialorder %v902_v3, 0.0004427343  ;;  %v928_v2 = vmul.f32 %v1879_v22, %v927_v46  ;;  %1392 = vpow2.f32 %v832_v15 }
 0x187   :  { %1036 = vrot.lane.b32.xlu0 %v1003_v55, %s1494_s6  ;;  %v830_v35 = vmul.f32 1.442695, %v804_v61  ;;  %v1007_v60 = vsel %vm751_vm15, %v1808_v10, %v991_v13  ;;  %v993_v30 = vadd.f32 %v913_v52, %v737_v40  ;;  %v904_v50 = vsel %vm903_vm2, %v901_v62, %v898_v24 }
 0x188   :  { %v925_v6 = vmul.f32 0.6931472, %v1389_v0  ;;  %v1006_v11 = vsel %vm750_vm0, %v1812_v23, %v990_v14  ;;  %v992_v22 = vadd.f32 %v904_v50, %v736_v47  ;;  %vm930_vm4 = vcmp.lt.f32.partialorder %v929_v54, 0.0004427343 }
 0x189   :  { %1394 = vpow2.f32 %v830_v35  ;;  %v739_v3 = vmax.f32 %v1832_v1, 0.0  ;;  %v1987_v40 = vmul.f32 %v1785_v38, %v1733_v58  ;;  %v1991_v4 = vmul.f32 %v1785_v38, %v1737_v17 }
 0x18a   :  { %1044 = vrot.lane.b32.xlu1 %v1007_v60, %s1494_s6  ;;  %v931_v56 = vsel %vm930_vm4, %v928_v2, %v925_v6  ;;  %vm753_vm5 = vcmp.ne.f32.partialorder %v1816_v21, %v1816_v21  ;;  %vm752_vm6 = vcmp.ne.f32.partialorder %v1828_v63, %v1828_v63  ;;  %v1391_v47 = vpop.eup %1390  ;;  %v959_v5 = vadd.f32 1.0, %v1866_v28 }
 0x18b   :  { %1042 = vrot.lane.b32.xlu0 %v1006_v11, %s1494_s6  ;;  %v1009_v7 = vsel %vm753_vm5, %v1816_v21, %v993_v30  ;;  %v995_v8 = vadd.f32 %v931_v56, %v739_v3  ;;  %v790_v16 = vand.u32 2147483647, %v1987_v40  ;;  %v1008_v58 = vsel %vm752_vm6, %v1828_v63, %v992_v22 }
 0x18c   :  { %v914_v17 = vadd.f32 1.0, %v1391_v47  ;;  %v2004_v53 = vmul.f32 %v1785_v38, %v1735_v32  ;;  %v793_v20 = vand.u32 2147483647, %v1991_v4  ;;  %vm755_vm7 = vcmp.ne.f32.partialorder %v1832_v1, %v1832_v1 }
 0x18d   :  { %v806_v19 = vsub.f32 0.0, %v790_v16  ;;  %v1011_v9 = vsel %vm755_vm7, %v1832_v1, %v995_v8  ;;  %v917_v38 = vmul.f32 -0.5, %v1391_v47  ;;  %v920_v57 = vand.u32 2147483647, %v1391_v47 }
 0x18e   :  { %1048 = vrot.lane.b32.xlu1 %v1009_v7, %s1494_s6  ;;  %1396 = vlog2.f32 %v914_v17  ;;  %v809_v33 = vsub.f32 0.0, %v793_v20  ;;  %v792_v32 = vand.u32 2147483647, %v2004_v53  ;;  %v962_v13 = vmul.f32 -0.5, %v1866_v28 }
 0x18f   :  { %1046 = vrot.lane.b32.xlu0 %v1008_v58, %s1494_s6  ;;  %1398 = vlog2.f32 %v959_v5  ;;  %v834_v12 = vmul.f32 1.442695, %v806_v19  ;;  %v918_v49 = vadd.f32 1.0, %v917_v38  ;;  %v738_v54 = vmax.f32 %v1838_v29, 0.0 }
 0x190   :  { %v1393_v36 = vpop.eup %1392  ;;  %v840_v45 = vmul.f32 1.442695, %v809_v33  ;;  %v808_v51 = vsub.f32 0.0, %v792_v32  ;;  %vm921_vm8 = vcmp.lt.f32.partialorder %v920_v57, 0.0004427343  ;;  %v963_v14 = vadd.f32 1.0, %v962_v13 }
 0x191   :  { %v941_v27 = vadd.f32 1.0, %v1393_v36  ;;  %1400 = vpow2.f32 %v834_v12  ;;  %v944_v48 = vmul.f32 -0.5, %v1393_v36  ;;  %v919_v18 = vmul.f32 %v1391_v47, %v918_v49 }
 0x192   :  { %1052 = vrot.lane.b32.xlu1 %v1011_v9, %s1494_s6  ;;  %v838_v46 = vmul.f32 1.442695, %v808_v51  ;;  %v947_v24 = vand.u32 2147483647, %v1393_v36  ;;  %v965_v62 = vand.u32 2147483647, %v1866_v28  ;;  %vm754_vm9 = vcmp.ne.f32.partialorder %v1838_v29, %v1838_v29 }
 0x193   :  { %v1395_v37 = vpop.eup %1394  ;;  %1402 = vlog2.f32 %v941_v27  ;;  %v945_v61 = vadd.f32 1.0, %v944_v48  ;;  %v741_v50 = vmax.f32 %v1849_v34, 0.0  ;;  %v743_v11 = vmax.f32 %v1788_v39, 0.0 }
 0x194   :  { %v932_v25 = vadd.f32 1.0, %v1395_v37  ;;  %1404 = vpow2.f32 %v840_v45  ;;  %v935_v15 = vmul.f32 -0.5, %v1395_v37  ;;  %v938_v6 = vand.u32 2147483647, %v1395_v37 }
 0x195   :  { %v946_v7 = vmul.f32 %v1393_v36, %v945_v61  ;;  %v964_v8 = vmul.f32 %v1866_v28, %v963_v14  ;;  %vm948_vm10 = vcmp.lt.f32.partialorder %v947_v24, 0.0004427343  ;;  %vm2023_vm11 = vcmp.lt.f32.partialorder %v965_v62, 0.0004427343 }
 0x196   :  { %1406 = vlog2.f32 %v932_v25  ;;  %v936_v35 = vadd.f32 1.0, %v935_v15  ;;  %v740_v28 = vmax.f32 %v1857_v31, 0.0  ;;  %vm939_vm12 = vcmp.lt.f32.partialorder %v938_v6, 0.0004427343 }
 0x197   :  { %1408 = vpow2.f32 %v838_v46  ;;  %vm757_vm13 = vcmp.ne.f32.partialorder %v1849_v34, %v1849_v34  ;;  %vm756_vm14 = vcmp.ne.f32.partialorder %v1857_v31, %v1857_v31  ;;  %vm759_vm15 = vcmp.ne.f32.partialorder %v1788_v39, %v1788_v39 }
 0x198   :  { %v1397_v59 = vpop.eup %1396  ;;  %v937_v20 = vmul.f32 %v1395_v37, %v936_v35  ;;  %v745_v35 = vmax.f32 %v1991_v4, 0.0  ;;  %vm758_vm2 = vcmp.ne.f32.partialorder %v1987_v40, %v1987_v40  ;;  %vm761_vm4 = vcmp.ne.f32.partialorder %v1991_v4, %v1991_v4 }
 0x199   :  { %v1399_v26 = vpop.eup %1398  ;;  %v916_v55 = vmul.f32 0.6931472, %v1397_v59  ;;  %vm760_vm6 = vcmp.ne.f32.partialorder %v2004_v53, %v2004_v53  ;;  %v1226_v16 = vmul.f32 -1.442695, %v1800_v43  ;;  %v1232_v43 = vmul.f32 -1.442695, %v1832_v1 }
 0x19a   :  { %v961_v60 = vmul.f32 0.6931472, %v1399_v26 }
 0x19b   :  { %v922_v52 = vsel %vm921_vm8, %v919_v18, %v916_v55  ;;  %v1401_v0 = vpop.eup %1400 }
 0x19c   :  { %v994_v2 = vadd.f32 %v922_v52, %v738_v54  ;;  %v950_v22 = vadd.f32 1.0, %v1401_v0  ;;  %v967_v9 = vsel %vm2023_vm11, %v964_v8, %v961_v60  ;;  %v953_v32 = vmul.f32 -0.5, %v1401_v0 }
 0x19d   :  { %v1403_v30 = vpop.eup %1402  ;;  %v999_v51 = vadd.f32 %v967_v9, %v743_v11  ;;  %v956_v57 = vand.u32 2147483647, %v1401_v0  ;;  %v742_v54 = vmax.f32 %v1987_v40, 0.0  ;;  %v1225_v8 = vmul.f32 -1.442695, %v1792_v41 }
 0x19e   :  { %v1405_v3 = vpop.eup %1404  ;;  %v1010_v56 = vsel %vm754_vm9, %v1838_v29, %v994_v2  ;;  %v943_v47 = vmul.f32 0.6931472, %v1403_v30  ;;  %1410 = vlog2.f32 %v950_v22  ;;  %v954_v49 = vadd.f32 1.0, %v953_v32 }
 0x19f   :  { %1050 = vrot.lane.b32.xlu0 %v1010_v56, %s1494_s6  ;;  %v977_v58 = vadd.f32 1.0, %v1405_v3  ;;  %v980_v37 = vmul.f32 -0.5, %v1405_v3  ;;  %v1015_v46 = vsel %vm759_vm15, %v1788_v39, %v999_v51  ;;  %v983_v15 = vand.u32 2147483647, %v1405_v3 }
 0x1a0   :  { %v1407_v5 = vpop.eup %1406  ;;  %v949_v17 = vsel %vm948_vm10, %v946_v7, %v943_v47  ;;  %v955_v55 = vmul.f32 %v1401_v0, %v954_v49  ;;  %vm957_vm0 = vcmp.lt.f32.partialorder %v956_v57, 0.0004427343  ;;  %v744_v22 = vmax.f32 %v2004_v53, 0.0 }
 0x1a1   :  { %v934_v19 = vmul.f32 0.6931472, %v1407_v5  ;;  %v1409_v12 = vpop.eup %1408  ;;  %v997_v33 = vadd.f32 %v949_v17, %v741_v50  ;;  %1412 = vlog2.f32 %v977_v58  ;;  %v981_v13 = vadd.f32 1.0, %v980_v37 }
 0x1a2   :  { %v968_v38 = vadd.f32 1.0, %v1409_v12  ;;  %v971_v48 = vmul.f32 -0.5, %v1409_v12  ;;  %v974_v62 = vand.u32 2147483647, %v1409_v12  ;;  %vm984_vm1 = vcmp.lt.f32.partialorder %v983_v15, 0.0004427343 }
 0x1a3   :  { %v940_v36 = vsel %vm939_vm12, %v937_v20, %v934_v19  ;;  %v1013_v27 = vsel %vm757_vm13, %v1849_v34, %v997_v33  ;;  %v982_v24 = vmul.f32 %v1405_v3, %v981_v13  ;;  %v1223_v5 = vmul.f32 -1.442695, %v1796_v42 }
 0x1a4   :  { %v996_v45 = vadd.f32 %v940_v36, %v740_v28  ;;  %1056 = vrot.lane.b32.xlu1 %v1013_v27, %s1494_s6  ;;  %1414 = vlog2.f32 %v968_v38  ;;  %v972_v61 = vadd.f32 1.0, %v971_v48  ;;  %vm975_vm5 = vcmp.lt.f32.partialorder %v974_v62, 0.0004427343 }
 0x1a5   :  { %1416 = vpow2.f32 %v1225_v8  ;;  %v1224_v58 = vmul.f32 -1.442695, %v1804_v44  ;;  %v1228_v17 = vmul.f32 -1.442695, %v1808_v10  ;;  %v1227_v19 = vmul.f32 -1.442695, %v1812_v23 }
 0x1a6   :  { %v1012_v25 = vsel %vm756_vm14, %v1857_v31, %v996_v45  ;;  %v973_v11 = vmul.f32 %v1409_v12, %v972_v61  ;;  %1418 = vpow2.f32 %v1223_v5  ;;  %v1230_v20 = vmul.f32 -1.442695, %v1816_v21 }
 0x1a7   :  { %1054 = vrot.lane.b32.xlu0 %v1012_v25, %s1494_s6  ;;  %1420 = vpow2.f32 %v1226_v16  ;;  %v1229_v41 = vmul.f32 -1.442695, %v1828_v63  ;;  %v1231_v49 = vmul.f32 -1.442695, %v1838_v29  ;;  %v1233_v29 = vmul.f32 -1.442695, %v1857_v31 }
 0x1a8   :  { %1060 = vrot.lane.b32.xlu1 %v1015_v46, %s1494_s6  ;;  %v1411_v59 = vpop.eup %1410  ;;  %1422 = vpow2.f32 %v1224_v58 }
 0x1a9   :  { %v952_v26 = vmul.f32 0.6931472, %v1411_v59  ;;  %1424 = vpow2.f32 %v1228_v17  ;;  %v1235_v17 = vmul.f32 -1.442695, %v1987_v40 }
 0x1aa   :  { %1426 = vpow2.f32 %v1227_v19 }
 0x1ab   :  { %v1413_v18 = vpop.eup %1412  ;;  %v958_v14 = vsel %vm957_vm0, %v955_v55, %v952_v26  ;;  %1428 = vpow2.f32 %v1230_v20 }
 0x1ac   :  { %v979_v52 = vmul.f32 0.6931472, %v1413_v18  ;;  %v998_v2 = vadd.f32 %v958_v14, %v742_v54  ;;  %1430 = vpow2.f32 %v1229_v41  ;;  %v1234_v14 = vmul.f32 -1.442695, %v1849_v34 }
 0x1ad   :  { %1432 = vpow2.f32 %v1232_v43  ;;  %v1237_v43 = vmul.f32 -1.442695, %v2004_v53 }
 0x1ae   :  { %v1415_v60 = vpop.eup %1414  ;;  %v985_v30 = vsel %vm984_vm1, %v982_v24, %v979_v52  ;;  %v1014_v0 = vsel %vm758_vm2, %v1987_v40, %v998_v2 }
 0x1af   :  { %v1001_v50 = vadd.f32 %v985_v30, %v745_v35  ;;  %v970_v6 = vmul.f32 0.6931472, %v1415_v60  ;;  %1058 = vrot.lane.b32.xlu0 %v1014_v0, %s1494_s6  ;;  %v1417_v9 = vpop.eup %1416  ;;  %v1236_v0 = vmul.f32 -1.442695, %v1788_v39 }
 0x1b0   :  { %v1419_v42 = vpop.eup %1418  ;;  %v684_v12 = vadd.f32 1.0, %v1417_v9  ;;  %v1238_v9 = vmul.f32 -1.442695, %v1991_v4 }
 0x1b1   :  { %v1017_v3 = vsel %vm761_vm4, %v1991_v4, %v1001_v50  ;;  %v976_v56 = vsel %vm975_vm5, %v973_v11, %v970_v6  ;;  %v1421_v44 = vpop.eup %1420  ;;  %v682_v33 = vadd.f32 1.0, %v1419_v42 }
 0x1b2   :  { %1064 = vrot.lane.b32.xlu1 %v1017_v3, %s1494_s6  ;;  %v1000_v47 = vadd.f32 %v976_v56, %v744_v22  ;;  %v1423_v28 = vpop.eup %1422  ;;  %1434 = vrcp.f32 %v684_v12  ;;  %v685_v10 = vadd.f32 1.0, %v1421_v44 }
 0x1b3   :  { %v1425_v23 = vpop.eup %1424  ;;  %1436 = vrcp.f32 %v682_v33  ;;  %v683_v36 = vadd.f32 1.0, %v1423_v28 }
 0x1b4   :  { %v1016_v7 = vsel %vm760_vm6, %v2004_v53, %v1000_v47  ;;  %v1427_v21 = vpop.eup %1426  ;;  %1438 = vrcp.f32 %v685_v10  ;;  %v687_v32 = vadd.f32 1.0, %v1425_v23 }
 0x1b5   :  { %1062 = vrot.lane.b32.xlu0 %v1016_v7, %s1494_s6  ;;  %v1429_v63 = vpop.eup %1428  ;;  %1440 = vrcp.f32 %v683_v36  ;;  %v686_v38 = vadd.f32 1.0, %v1427_v21 }
 0x1b6   :  { %v1431_v27 = vpop.eup %1430  ;;  %1442 = vrcp.f32 %v687_v32  ;;  %v689_v1 = vadd.f32 1.0, %v1429_v63 }
 0x1b7   :  { %v1433_v45 = vpop.eup %1432  ;;  %1444 = vrcp.f32 %v686_v38  ;;  %v688_v51 = vadd.f32 1.0, %v1431_v27 }
 0x1b8   :  { %1446 = vrcp.f32 %v689_v1  ;;  %v691_v59 = vadd.f32 1.0, %v1433_v45 }
 0x1b9   :  { %1448 = vrcp.f32 %v688_v51 }
 0x1ba   :  { %1450 = vpow2.f32 %v1231_v49 }
 0x1bb   :  { %1452 = vrcp.f32 %v691_v59 }
 0x1bc   :  { %v1435_v37 = vpop.eup %1434  ;;  %1454 = vpow2.f32 %v1234_v14 }
 0x1bd   :  { %v1437_v46 = vpop.eup %1436  ;;  %1456 = vpow2.f32 %v1233_v29 }
 0x1be   :  { %v1439_v15 = vpop.eup %1438  ;;  %1458 = vpow2.f32 %v1236_v0 }
 0x1bf   :  { %v1441_v18 = vpop.eup %1440  ;;  %1460 = vpow2.f32 %v1235_v17 }
 0x1c0   :  { %v1443_v24 = vpop.eup %1442 }
 0x1c1   :  { %v1445_v35 = vpop.eup %1444 }
 0x1c2   :  { %v1447_v11 = vpop.eup %1446 }
 0x1c3   :  { %v1449_v34 = vpop.eup %1448 }
 0x1c4   :  { %v1451_v31 = vpop.eup %1450 }
 0x1c5   :  { %v1453_v5 = vpop.eup %1452  ;;  %v690_v39 = vadd.f32 1.0, %v1451_v31 }
 0x1c6   :  { %v1455_v20 = vpop.eup %1454 }
 0x1c7   :  { %v1457_v42 = vpop.eup %1456  ;;  %1462 = vrcp.f32 %v690_v39  ;;  %v693_v12 = vadd.f32 1.0, %v1455_v20 }
 0x1c8   :  { %v1459_v44 = vpop.eup %1458  ;;  %1464 = vpow2.f32 %v1238_v9  ;;  %v692_v33 = vadd.f32 1.0, %v1457_v42 }
 0x1c9   :  { %1466 = vpow2.f32 %v1237_v43  ;;  %v695_v28 = vadd.f32 1.0, %v1459_v44  ;;  %v1461_v40 = vpop.eup %1460 }
 0x1ca   :  { %1468 = vrcp.f32 %v693_v12  ;;  %v694_v32 = vadd.f32 1.0, %v1461_v40  ;;  %v1491_v40 = vld [vmem:[%s2095_s0 + $0x8] sm:$0xff] }
 0x1cb   :  { %1470 = vrcp.f32 %v692_v33  ;;  %v1490_v33 = vld [vmem:[%s2095_s0] sm:$0xff] }
 0x1cc   :  { %1472 = vrcp.f32 %v695_v28 }
 0x1cd   :  { %1474 = vrcp.f32 %v694_v32 }
 0x1d1   :  { %v1463_v10 = vpop.eup %1462 }
 0x1d2   :  { %v1465_v21 = vpop.eup %1464 }
 0x1d3   :  { %v1467_v63 = vpop.eup %1466  ;;  %v697_v53 = vadd.f32 1.0, %v1465_v21 }
 0x1d4   :  { %v1469_v38 = vpop.eup %1468  ;;  %v696_v49 = vadd.f32 1.0, %v1467_v63 }
 0x1d5   :  { %v1471_v45 = vpop.eup %1470  ;;  %1476 = vrcp.f32 %v697_v53 }
 0x1d6   :  { %1478 = vrcp.f32 %v696_v49 }
 0x1f4   :  { %v1039_v25 = vpop.permute.xlu1 %1038 }
 0x1f5   :  { %v1084_v57 = vmul.f32 %v1435_v37, %v1039_v25  ;;  %v1035_v48 = vpop.permute.xlu0 %1034 }
 0x1f6   :  { %v1082_v13 = vmul.f32 %v1437_v46, %v1035_v48  ;;  %v1473_v46 = vpop.eup %1472 }
 0x1f8   :  { %v1098_v26 = vadd.f32 %v1084_v57, %v1082_v13  ;;  %v1041_v55 = vpop.permute.xlu1 %1040 }
 0x1f9   :  { %v1085_v54 = vmul.f32 %v1439_v15, %v1041_v55  ;;  %v1037_v61 = vpop.permute.xlu0 %1036  ;;  %v1475_v15 = vpop.eup %1474 }
 0x1fa   :  { %v1083_v52 = vmul.f32 %v1441_v18, %v1037_v61  ;;  %v1477_v18 = vpop.eup %1476 }
 0x1fc   :  { %v1099_v62 = vadd.f32 %v1085_v54, %v1083_v52  ;;  %v1045_v2 = vpop.permute.xlu1 %1044  ;;  %v1479_v52 = vpop.eup %1478 }
 0x1fd   :  { %v1087_v60 = vmul.f32 %v1443_v24, %v1045_v2  ;;  %v1043_v30 = vpop.permute.xlu0 %1042 }
 0x1fe   :  { %v1086_v50 = vmul.f32 %v1445_v35, %v1043_v30 }
 0x1ff   :  { %v1101_v6 = vadd.f32 %v1099_v62, %v1087_v60 }
 0x200   :  { %v1100_v22 = vadd.f32 %v1098_v26, %v1086_v50  ;;  %v1049_v3 = vpop.permute.xlu1 %1048 }
 0x201   :  { %v1089_v56 = vmul.f32 %v1447_v11, %v1049_v3  ;;  %v1047_v47 = vpop.permute.xlu0 %1046 }
 0x202   :  { %v1088_v7 = vmul.f32 %v1449_v34, %v1047_v47 }
 0x203   :  { %v1103_v8 = vadd.f32 %v1101_v6, %v1089_v56 }
 0x204   :  { %v1102_v16 = vadd.f32 %v1100_v22, %v1088_v7  ;;  %v1053_v58 = vpop.permute.xlu1 %1052 }
 0x205   :  { %v1091_v19 = vmul.f32 %v1453_v5, %v1053_v58 }
 0x207   :  { %v1105_v41 = vadd.f32 %v1103_v8, %v1091_v19 }
 0x211   :  { %v1051_v23 = vpop.permute.xlu0 %1050 }
 0x212   :  { %v1090_v36 = vmul.f32 %v1463_v10, %v1051_v23 }
 0x214   :  { %v1104_v4 = vadd.f32 %v1102_v16, %v1090_v36 }
 0x216   :  { %v1057_v27 = vpop.permute.xlu1 %1056 }
 0x217   :  { %v1093_v1 = vmul.f32 %v1469_v38, %v1057_v27 }
 0x219   :  { %v1055_v51 = vpop.permute.xlu0 %1054  ;;  %v1107_v37 = vadd.f32 %v1105_v41, %v1093_v1 }
 0x21a   :  { %v1092_v25 = vmul.f32 %v1471_v45, %v1055_v51  ;;  %v1061_v57 = vpop.permute.xlu1 %1060 }
 0x21b   :  { %v1095_v13 = vmul.f32 %v1473_v46, %v1061_v57 }
 0x21c   :  { %v1106_v48 = vadd.f32 %v1104_v4, %v1092_v25 }
 0x21d   :  { %v1109_v59 = vadd.f32 %v1107_v37, %v1095_v13 }
 0x221   :  { %v1059_v26 = vpop.permute.xlu0 %1058 }
 0x222   :  { %v1094_v55 = vmul.f32 %v1475_v15, %v1059_v26 }
 0x224   :  { %v1065_v54 = vpop.permute.xlu1 %1064  ;;  %v1108_v61 = vadd.f32 %v1106_v48, %v1094_v55 }
 0x225   :  { %v1097_v14 = vmul.f32 %v1477_v18, %v1065_v54 }
 0x227   :  { %v1111_v29 = vadd.f32 %v1109_v59, %v1097_v14  ;;  %v1063_v24 = vpop.permute.xlu0 %1062 }
 0x228   :  { %v1096_v62 = vmul.f32 %v1479_v52, %v1063_v24 }
 0x229   :  { %v1113_v2 = vsel %vm46_vm3, %v1111_v29, 0.0 }
 0x22a   :  { %v1110_v35 = vadd.f32 %v1108_v61, %v1096_v62 }
 0x22c   :  { %v1112_v60 = vsel %vm46_vm3, %v1110_v35, 0.0 }
 0x22d   :  { %v1114_v30 = vadd.f32 %v1113_v2, %v1112_v60 }
 0x22f   :  { %v1115_v0 = vrot.slane %v1114_v30, 4 }
 0x231   :  { %v1116_v50 = vadd.f32 %v1115_v0, %v1114_v30 }
 0x233   :  { %v1117_v6 = vrot.slane %v1116_v50, 2 }
 0x235   :  { %v1118_v11 = vadd.f32 %v1117_v6, %v1116_v50 }
 0x237   :  { %v1119_v22 = vrot.slane %v1118_v11, 1 }
 0x239   :  { %v1120_v3 = vadd.f32 %v1119_v22, %v1118_v11 }
 0x23b   :  { %v1122_v34 = vmul.f32 0.0625, %v1120_v3 }
 0x23d   :  { %v1123_v56 = vsub.f32 %v1110_v35, %v1122_v34  ;;  %v1124_v47 = vsub.f32 %v1111_v29, %v1122_v34 }
 0x23f   :  { %v1125_v31 = vmul.f32 %v1123_v56, %v1123_v56  ;;  %v1126_v7 = vmul.f32 %v1124_v47, %v1124_v47 }
 0x241   :  { %v1127_v8 = vsel %vm46_vm3, %v1125_v31, 0.0  ;;  %v1128_v5 = vsel %vm46_vm3, %v1126_v7, 0.0 }
 0x242   :  { %v1129_v16 = vadd.f32 %v1128_v5, %v1127_v8 }
 0x244   :  { %v1130_v58 = vrot.slane %v1129_v16, 4 }
 0x246   :  { %v1131_v17 = vadd.f32 %v1130_v58, %v1129_v16 }
 0x248   :  { %v1132_v19 = vrot.slane %v1131_v17, 2 }
 0x24a   :  { %v1133_v39 = vadd.f32 %v1132_v19, %v1131_v17 }
 0x24c   :  { %v1134_v20 = vrot.slane %v1133_v39, 1 }
 0x24e   :  { %v1135_v41 = vadd.f32 %v1134_v20, %v1133_v39 }
 0x250   :  { %v1136_v9 = vmul.f32 0.0625, %v1135_v41 }
 0x252   :  { %v1137_v42 = vadd.f32 1e-05, %v1136_v9 }
 0x254   :  { %1480 = vrsqrt.f32 %v1137_v42 }
 0x25e   :  { %v1481_v43 = vpop.eup %1480 }
 0x25f   :  { %v1139_v12 = vmul.f32 %v1481_v43, %v1123_v56  ;;  %v1140_v44 = vmul.f32 %v1481_v43, %v1124_v47 }
 0x261   :  { %v1141_v28 = vadd.f32 %v1490_v33, %v1139_v12  ;;  %v1142_v10 = vadd.f32 %v1491_v40, %v1140_v44 }
 0x263   :  { %v1149_v23 = vand.u32 2147483647, %v1141_v28  ;;  %v1150_v36 = vand.u32 2147483647, %v1142_v10  ;;  %v1143_v15 = vmax.f32 %v1141_v28, 0.0  ;;  %v1144_v18 = vmax.f32 %v1142_v10, 0.0 }
 0x264   :  { %vm1145_vm9 = vcmp.ne.f32.partialorder %v1141_v28, %v1141_v28  ;;  %vm1146_vm10 = vcmp.ne.f32.partialorder %v1142_v10, %v1142_v10 }
 0x265   :  { %v1151_v21 = vsub.f32 0.0, %v1149_v23  ;;  %v1152_v4 = vsub.f32 0.0, %v1150_v36 }
 0x267   :  { %v1153_v32 = vmul.f32 1.442695, %v1151_v21  ;;  %v1155_v63 = vmul.f32 1.442695, %v1152_v4 }
 0x269   :  { %1482 = vpow2.f32 %v1153_v32 }
 0x26a   :  { %1484 = vpow2.f32 %v1155_v63 }
 0x273   :  { %v1483_v38 = vpop.eup %1482 }
 0x274   :  { %v1485_v27 = vpop.eup %1484  ;;  %v1157_v53 = vadd.f32 1.0, %v1483_v38  ;;  %v1160_v45 = vmul.f32 -0.5, %v1483_v38  ;;  %v1163_v25 = vand.u32 2147483647, %v1483_v38 }
 0x275   :  { %v1166_v1 = vadd.f32 1.0, %v1485_v27  ;;  %v1169_v51 = vmul.f32 -0.5, %v1485_v27  ;;  %v1172_v46 = vand.u32 2147483647, %v1485_v27 }
 0x276   :  { %1486 = vlog2.f32 %v1157_v53  ;;  %v1161_v37 = vadd.f32 1.0, %v1160_v45  ;;  %vm1164_vm7 = vcmp.lt.f32.partialorder %v1163_v25, 0.0004427343 }
 0x277   :  { %1488 = vlog2.f32 %v1166_v1  ;;  %v1170_v49 = vadd.f32 1.0, %v1169_v51  ;;  %vm1173_vm8 = vcmp.lt.f32.partialorder %v1172_v46, 0.0004427343 }
 0x278   :  { %v1162_v59 = vmul.f32 %v1483_v38, %v1161_v37 }
 0x279   :  { %v1171_v55 = vmul.f32 %v1485_v27, %v1170_v49 }
 0x280   :  { %v1487_v57 = vpop.eup %1486 }
 0x281   :  { %v1489_v48 = vpop.eup %1488  ;;  %v1159_v13 = vmul.f32 0.6931472, %v1487_v57 }
 0x282   :  { %v1168_v26 = vmul.f32 0.6931472, %v1489_v48 }
 0x283   :  { %v1165_v54 = vsel %vm1164_vm7, %v1162_v59, %v1159_v13 }
 0x284   :  { %v1174_v61 = vsel %vm1173_vm8, %v1171_v55, %v1168_v26  ;;  %v1175_v14 = vadd.f32 %v1165_v54, %v1143_v15 }
 0x285   :  { %v1176_v52 = vadd.f32 %v1174_v61, %v1144_v18 }
 0x286   :  { %v1177_v29 = vsel %vm1145_vm9, %v1141_v28, %v1175_v14 }
 0x287   :  { %v1178_v24 = vsel %vm1146_vm10, %v1142_v10, %v1176_v52  ;;  %1179 = vst.msk [vmem:[%s2098_s7] sm:$0xff] %vm46_vm3, %v1177_v29 }
 0x288   :  { %1180 = vst.msk [vmem:[%s2098_s7 + $0x8] sm:$0xff] %vm46_vm3, %v1178_v24 }

// kernel: simclr_forward.7
= control target key start
LH: loop header
LB: loop body
LE: loop exit
PB: predicated region body
PF: predicated region fallthrough
CT: control target
= control target key end

     0   :  { %v236_v1 = vmov 0.0   ;;  %vm237_vm0 = vmmov 0   ;;  %s302_s0 = inlined_call_operand.vmem [shape: f32[2,32], index: 0, kind: input, shape index: {}]   ;;  %s303_s1 = inlined_call_operand.vmem [shape: bf16[32,32], index: 1, kind: input, shape index: {}]   ;;  %s304_s2 = inlined_call_operand.vmem [shape: f32[1,32], index: 2, kind: input, shape index: {}]   ;;  %s305_s3 = inlined_call_operand.vmem [shape: bf16[32,32], index: 3, kind: input, shape index: {}]   ;;  %s306_s4 = inlined_call_operand.vmem [shape: f32[1,32], index: 4, kind: input, shape index: {}]   ;;  %s307_s5 = inlined_call_operand.hbm [shape: f32[2,32], index: 5, kind: output, shape index: {}]  }
   0x1   :  { %v208_v0 = vld [vmem:[%s303_s1] sm:$0xff]   ;;  %189 = vmatprep.subr.bf16.mxu0 %v236_v1  ;;  %197 = vmatprep.subr.bf16.mxu1 %v236_v1  ;;  %v209_v2 = vld [vmem:[%s303_s1 + $0x8] sm:$0xff]  }
   0x2   :  { %190 = vmatpush3.bf16.msra.mxu0 %v208_v0  ;;  %193 = vmatprep.mubr.msk.bf16.mxu0 %vm237_vm0, %v236_v1  ;;  %v22_v3 = vld [vmem:[%s302_s0] sm:$0x3] }
   0x3   :  { %191 = vmatprep.subr.bf16.mxu0 %v236_v1  ;;  %201 = vmatprep.mubr.msk.bf16.mxu1 %vm237_vm0, %v236_v1 }
   0x4   :  { %10 = vsyncpa [#allocation3], 0  ;;  %v23_v4 = vpack.c.bf16 %v22_v3, %v22_v3  ;;  %vm47_vm1 = vcmask 261120   ;;  %v210_v5 = vld [vmem:[%s305_s3] sm:$0xff]   ;;  %v211_v6 = vld [vmem:[%s305_s3 + $0x8] sm:$0xff]   ;;  %s238_s30 = smov [#allocation2]  }
   0x5   :  { %198 = vmatpush3.bf16.msra.mxu1 %v210_v5  ;;  %v175_v7 = vld [vmem:[%s304_s2] ss:$0 sm:$0xff]  ;;  %s167_s6 = sshll.u32 %s238_s30, 4  ;;  %vm159_vm2 = vcmask 254976   ;;  %s168_s6 = int_to_ptr.vmem [resolvable:$true] %s167_s6 }
   0x6   :  { %192 = vmatpush3.bf16.msra.mxu0 %v209_v2  ;;  %199 = vmatprep.subr.bf16.mxu1 %v236_v1  ;;  %v179_v15 = vld [vmem:[%s306_s4] ss:$0 sm:$0xff]  ;;  %s212_s2 = scalar_lea.vmem %s168_s6, 32  ;;  %p217_p1 = scmp.lt.s32.totalorder %s168_s6, %s168_s6 }
   0x7   :  { %p213_p0 = scmp.ne.s32.totalorder %s168_s6, %s212_s2  ;;  %p218_p2 = scmp.lt.s32.totalorder %s212_s2, %s212_s2 }
   0x9   :  { %194 = vmatmul.mubr.msk.bf16.vlgmr.msra.gmra.mrb[0].mxu0 %vm47_vm1, %v23_v4  ;;  %200 = vmatpush3.bf16.msra.mxu1 %v211_v6  ;;  %p219_p3 = por %p218_p2, %p217_p1 }
   0xb   :  { %p220_p4 = pnand %p219_p3, %p213_p0 }
  0xdc   :  { %v85_v8 = vpop.f32.mrb[0].mxu0 }
  0xdd   :  { %v86_v9 = vadd.f32 %v175_v7, %v85_v8  ;;  %v195_v10 = vpop.f32.mrb[1].mxu0 }
  0xde   :  { %v88_v11 = vpop.f32.mrb[2].mxu0 }
  0xdf   :  { %v91_v12 = vmax.f32 %v86_v9, 0.0  ;;  %v196_v13 = vpop.f32.mrb[3].mxu0 }
  0xe1   :  { %v92_v14 = vpack.c.bf16 %v91_v12, %v91_v12 }
  0xe3   :  { %202 = vmatmul.mubr.msk.bf16.vlgmr.msra.gmra.mrb[0].mxu1 %vm47_vm1, %v92_v14 }
 0x1b6   :  { %v153_v16 = vpop.f32.mrb[0].mxu1 }
 0x1b7   :  { %v154_v17 = vadd.f32 %v179_v15, %v153_v16  ;;  %v203_v18 = vpop.f32.mrb[1].mxu1 }
 0x1b8   :  { %v156_v19 = vpop.f32.mrb[2].mxu1 }
 0x1b9   :  { %v204_v20 = vpop.f32.mrb[3].mxu1  ;;  %160 = vst.msk [vmem:[#allocation2] sm:$0x3] %vm159_vm2, %v154_v17 }
 0x1ba   :  { %223 = shalt.err (!%p220_p4)
}
 0x1bb   :  { %s224_s4 = scalar_lea.hbm %s307_s5, 32 }
 0x1bc   :  { %p225_p5 = scmp.ne.s32.totalorder %s307_s5, %s224_s4  ;;  %p228_p6 = scmp.lt.u32.totalorder %s224_s4, %s307_s5 }
 0x1be   :  { %p230_p7 = pnand %p228_p6, %p225_p5 }
 0x1c0   :  { %233 = shalt.err (!%p230_p7)
}
 0x1c1   :  { %170 = dma.vmem_to_hbm [thread:$0]  %s168_s6, 32, %s307_s5, [#allocation3]  }
 0x1c2   :  { %234 = dma.done.wait [#allocation3], 32  }
 0x1c3   :  { %235 = vsyncadd [#allocation3], 4294967264 }
 0x1c4   :  { %174 = vsyncpa [#allocation3], 1 }

</bundles_post_ra>
